<compile_context>
chip_gen: v7x
topology: tpu7x:2x2x1
jax: 0.10.0
libtpu: 0.0.40
codegen_flags: <defaults>
</compile_context>

<pallas_src>
import jax
import jax.numpy as jnp
from jax.experimental import pallas as pl
from jax.experimental.pallas import tpu as pltpu

# ---------------- model hyper-parameters (small, consistent with the module) -------------
BATCH         = 2
T_IN          = 16                      # encoder input timesteps
N_INPUTS      = 4                       # encoder input features
CONV_STRIDE   = 2                       # subnet_params.decimation_factor (kernel == stride)
N_EMB_ENC     = 8                       # layer_sizes['encoder_embedding'] = [8]
H_ENC         = 16                      # layer_sizes['encoder_rnn'] = [16, 16]
N_ENC_LAYERS  = 2
N_PROJ_HID    = 16                      # layer_sizes['encoder_0_projection'] = [16]
N_TARGETS     = 10                      # data_manifests['encoder_0_targets'].num_features
L_ENC         = T_IN // CONV_STRIDE     # valid frames for full-length sequences (= 8)

B_PAD         = 8                       # batch rows padded to one sublane tile
N_TGT_PAD     = 32                      # projection-2 output lanes padded to 32
G_ENC         = 8 * H_ENC               # combined gate width: 4 gates x 2 dirs x H = 128

# matmul operand dtype (accumulation is always f32 via preferred_element_type).
MXU_DTYPE = jnp.bfloat16

# output-slab column layout (lane-dense (L*B_PAD, 128) f32 slab)
_COL_Y0 = 0                              # [:, 0:32]   layer-0 outputs
_COL_Y1 = 2 * H_ENC                      # [:, 32:64]  layer-1 outputs
_COL_NP = 4 * H_ENC                      # [:, 64:96]  natural params (first 10 lanes used)
_COL_ST = 4 * H_ENC + N_TGT_PAD          # [:, 96:128] final states (rows 0:32 used)


# ------------------------------- fused encoder kernel ------------------------------------
def _bilstm_unrolled(x_all, wih_both, whh_blk, b_cat, fwd_mask, *, L, B, H, reverse_input):
    """Fused forward+backward LSTM over a full sequence, fully unrolled.

    x_all    : (L*B, N_in)  layer input, rows grouped by time (B rows per frame).
    wih_both : (N_in, 16H)  [fwd-gate-cols | bwd-gate-cols], gate-major/dir-minor layout.
    whh_blk  : (2H, 8H)     block-diagonal recurrent weights (rows: [h_fwd | h_bwd]).
    b_cat    : (1, 8H)      combined (b_ih + b_hh) biases for both directions (f32).
    fwd_mask : (B, 2H) bool lane mask, True on the fwd half [0:H).
    reverse_input=True  (layer 0): the RNN consumes the frames in REVERSED order
      (reverse_sequences), so the fwd stream reads frame L-1-s and the bwd stream frame s.
    Returns (y_all (L*B, 2H) in RNN time order, h_final (B, 2H), c_final (B, 2H)),
    state/output lane layout = [fwd(0:H) | bwd(H:2H)].
    """
    G = 8 * H
    f32 = jnp.float32

    # hoisted input projection for ALL timesteps and BOTH directions (off the serial chain)
    gxw = jnp.dot(x_all.astype(MXU_DTYPE), wih_both,
                  preferred_element_type=f32)                        # (L*B, 2G)
    gx_f = gxw[:, :G] + b_cat                                        # bias folded in once
    gx_b = gxw[:, G:]

    # pre-summed, h-independent per-step gate inputs (sublane-aligned slices, B == 8)
    gx_steps = []
    for s in range(L):
        tf = (L - 1 - s) if reverse_input else s                     # fwd-stream frame
        tb = L - 1 - tf                                              # bwd-stream frame
        gx_steps.append(gx_f[tf * B:(tf + 1) * B, :] + gx_b[tb * B:(tb + 1) * B, :])

    h = jnp.zeros((B, 2 * H), f32)
    c = jnp.zeros((B, 2 * H), f32)
    hs = []
    for s in range(L):                                               # fully unrolled (L=8)
        gates = gx_steps[s] + jnp.dot(h.astype(MXU_DTYPE), whh_blk,
                                      preferred_element_type=f32)    # (B, 8H)
        sg = jax.nn.sigmoid(gates)          # one EUP pass over the full 128-lane vreg
        tg = jnp.tanh(gates)                # one EUP pass over the full 128-lane vreg
        i_g = sg[:, 0 * 2 * H:1 * 2 * H]
        f_g = sg[:, 1 * 2 * H:2 * 2 * H]
        g_g = tg[:, 2 * 2 * H:3 * 2 * H]
        o_g = sg[:, 3 * 2 * H:4 * 2 * H]
        c = f_g * c + i_g * g_g
        h = o_g * jnp.tanh(c)
        hs.append(h)

    # reassemble layer output in RNN time order with a lane select (no lane concats):
    #   y[t] = [ fwd-state after RNN step t | bwd-state after RNN step L-1-t ]
    ys = [jnp.where(fwd_mask, hs[t], hs[L - 1 - t]) for t in range(L)]
    y_all = jnp.concatenate(ys, axis=0)                              # (L*B, 2H)
    return y_all, hs[-1], c


def _encoder_kernel(x_ref, w_ref, b_ref, out_ref):
    H, BP, L, G = H_ENC, B_PAD, L_ENC, G_ENC
    f32 = jnp.float32

    # ---- unpack pre-packed weight / bias slabs (static slices, one-time loads) ----------
    wih0   = w_ref[0:8, :]                          # (8, 2G)   layer-0 input weights
    wih1   = w_ref[8:40, :]                         # (2H, 2G)  layer-1 input weights
    whh0   = w_ref[40:72, 0:G]                      # (2H, G)   layer-0 recurrent (blk-diag)
    whh1   = w_ref[40:72, G:2 * G]                  # (2H, G)   layer-1 recurrent (blk-diag)
    conv_w = w_ref[72:80, 0:N_EMB_ENC]              # (S*C, 8)  Conv1d embedding
    p1w    = w_ref[80:112, 0:N_PROJ_HID]            # (2H, P)
    p2w    = w_ref[112:128, 0:N_TGT_PAD]            # (P, 32)   cols >= N_TARGETS are zero
    b0     = b_ref[0:1, :]                          # (1, G) f32
    b1     = b_ref[1:2, :]                          # (1, G) f32
    p1b    = b_ref[2:3, 0:N_PROJ_HID]               # (1, P)
    p2b    = b_ref[3:4, 0:N_TGT_PAD]                # (1, 32)

    # lane mask selecting the fwd half [0:H) of a 2H-wide state vreg (built once per call)
    fwd_mask = jax.lax.broadcasted_iota(jnp.int32, (BP, 2 * H), 1) < H

    # ---- Conv1d embedding (bias=False) as one patch matmul; frames in natural order -----
    conv = jnp.dot(x_ref[...].astype(MXU_DTYPE), conv_w,
                   preferred_element_type=f32)                       # (L*BP, N_EMB_ENC)
    # F.dropout(...) -> identity (eval mode).

    # ---- layer 0: bidirectional LSTM over the time-REVERSED conv frames -----------------
    y0, hT0, cT0 = _bilstm_unrolled(conv, wih0, whh0, b0, fwd_mask,
                                    L=L, B=BP, H=H, reverse_input=True)
    # ---- layer 1 -------------------------------------------------------------------------
    y1, hT1, cT1 = _bilstm_unrolled(y0, wih1, whh1, b1, fwd_mask,
                                    L=L, B=BP, H=H, reverse_input=False)

    # ---- RNNProjection on all_outputs[0] (input_list_index = 0): relu(Linear) -> Linear --
    hid = jnp.maximum(
        jnp.dot(y0.astype(MXU_DTYPE), p1w, preferred_element_type=f32) + p1b, 0.0)
    natp = jnp.dot(hid.astype(MXU_DTYPE), p2w, preferred_element_type=f32) + p2b  # (L*BP,32)

    # ---- single lane-dense (L*BP, 128) output slab; one unmasked full-tile store ---------
    # final states, PyTorch order: [layer0-fwd, layer0-bwd, layer1-fwd, layer1-bwd] live in
    # the state column block as row blocks [hT0 | cT0 | hT1 | cT1] (split into halves later).
    states = jnp.concatenate([hT0, cT0, hT1, cT1], axis=0)                       # (4*BP, 2H)
    states = jnp.concatenate(
        [states, jnp.zeros((L * BP - 4 * BP, 2 * H), f32)], axis=0)              # (L*BP, 2H)
    out_ref[...] = jnp.concatenate([y0, y1, natp, states], axis=-1)              # (L*BP, 128)


# ------------------------------- jitted wrapper -------------------------------------------
@jax.jit
def encoder_forward(params, inputs):
    """inputs: (B, T, N_inputs) f32 -> (all_outputs, (h_n, c_n), natural_params_dict)."""
    B, T, C = inputs.shape
    L = T // CONV_STRIDE
    assert (B, T, C) == (BATCH, T_IN, N_INPUTS) and L == L_ENC
    H, BP = H_ENC, B_PAD

    # conv-as-matmul patches (kernel width == stride -> disjoint patches), padded to 8
    # batch rows so all per-step slices inside the kernel are sublane-tile aligned.
    # Layout plumbing only; only the first L frames are consumed downstream.
    x = inputs[:, :L * CONV_STRIDE, :].reshape(B, L, CONV_STRIDE * C)    # (B, L, S*C)
    x = jnp.transpose(x, (1, 0, 2))                                      # (L, B, S*C)
    x = jnp.pad(x, ((0, 0), (0, BP - B), (0, 0)))                        # (L, BP, S*C)
    patches = x.reshape(L * BP, CONV_STRIDE * C)                         # (L*BP, S*C)

    slab = pl.pallas_call(
        _encoder_kernel,
        out_shape=jax.ShapeDtypeStruct((L * BP, 128), jnp.float32),
        in_specs=[pl.BlockSpec(memory_space=pltpu.MemorySpace.VMEM)] * 3,
        out_specs=pl.BlockSpec(memory_space=pltpu.MemorySpace.VMEM),
        compiler_params=pltpu.CompilerParams(vmem_limit_bytes=16 * 1024 * 1024),
    )(patches, params['w'], params['b'])

    # ---- unpack the slab (XLA-side slicing / reshaping; padded rows/cols dropped) --------
    y0 = slab[:, _COL_Y0:_COL_Y0 + 2 * H].reshape(L, BP, 2 * H)[:, :B, :]
    y1 = slab[:, _COL_Y1:_COL_Y1 + 2 * H].reshape(L, BP, 2 * H)[:, :B, :]
    natp = slab[:, _COL_NP:_COL_NP + N_TARGETS].reshape(L, BP, N_TARGETS)[:, :B, :]
    st = slab[:, _COL_ST:_COL_ST + 2 * H]
    hT0, cT0 = st[0 * BP:0 * BP + B], st[1 * BP:1 * BP + B]
    hT1, cT1 = st[2 * BP:2 * BP + B], st[3 * BP:3 * BP + B]

    all_outputs = (y0, y1)                                                # each (L, B, 2H)
    h_n = jnp.stack([hT0[:, :H], hT0[:, H:], hT1[:, :H], hT1[:, H:]], axis=0)
    c_n = jnp.stack([cT0[:, :H], cT0[:, H:], cT1[:, :H], cT1[:, H:]], axis=0)
    natural_params = {'encoder_0_targets': natp.transpose(1, 0, 2)}       # (B, T', N_targets)
    return all_outputs, (h_n, c_n), natural_params


# ------------------------------- deterministic init ---------------------------------------
def _interleave_gates(wf, wb, H):
    """Reorder per-direction gate blocks [i f g o] into combined columns
    [i_f i_b | f_f f_b | g_f g_b | o_f o_b] (gate-major, direction-minor)."""
    cols = []
    for g in range(4):
        cols.append(wf[:, g * H:(g + 1) * H])
        cols.append(wb[:, g * H:(g + 1) * H])
    return jnp.concatenate(cols, axis=1)


def init_params(key):
    """Build the two pre-packed operand slabs (one-time host-side layout transform)."""
    ks = iter(jax.random.split(key, 24))
    nrm = lambda shape: 0.1 * jax.random.normal(next(ks), shape, jnp.float32)
    H = H_ENC

    # Conv1d weight in patch layout: row index = k*C + c, col = out channel.
    conv_w = nrm((CONV_STRIDE * N_INPUTS, N_EMB_ENC))

    def make_layer(n_in):
        wih_f, whh_f, b_f = nrm((n_in, 4 * H)), nrm((H, 4 * H)), nrm((1, 4 * H))  # b=b_ih+b_hh
        wih_b, whh_b, b_b = nrm((n_in, 4 * H)), nrm((H, 4 * H)), nrm((1, 4 * H))
        z_i = jnp.zeros((n_in, 4 * H), jnp.float32)
        z_h = jnp.zeros((H, 4 * H), jnp.float32)
        wih_both = jnp.concatenate([_interleave_gates(wih_f, z_i, H),
                                    _interleave_gates(z_i, wih_b, H)], axis=1)   # (n_in, 16H)
        whh_blk = jnp.concatenate([_interleave_gates(whh_f, z_h, H),
                                   _interleave_gates(z_h, whh_b, H)], axis=0)    # (2H, 8H)
        b_cat = _interleave_gates(b_f, b_b, H)                                   # (1, 8H)
        return wih_both, whh_blk, b_cat

    wih0, whh0, b0 = make_layer(N_EMB_ENC)     # (8,256), (32,128), (1,128)
    wih1, whh1, b1 = make_layer(2 * H)         # (32,256), (32,128), (1,128)

    p1_w, p1_b = nrm((2 * H, N_PROJ_HID)), nrm((1, N_PROJ_HID))
    p2_w, p2_b = nrm((N_PROJ_HID, N_TARGETS)), nrm((1, N_TARGETS))
    # pad projection-2 output width to 32 lanes (zero cols) -> lane-block-aligned natp block
    p2_w_pad = jnp.zeros((N_PROJ_HID, N_TGT_PAD), jnp.float32).at[:, :N_TARGETS].set(p2_w)
    p2_b_pad = jnp.zeros((1, N_TGT_PAD), jnp.float32).at[:, :N_TARGETS].set(p2_b)

    # ---- single bf16 weight slab (128, 256) ----
    w = jnp.zeros((128, 256), jnp.float32)
    w = w.at[0:8, :].set(wih0)
    w = w.at[8:40, :].set(wih1)
    w = w.at[40:72, 0:128].set(whh0)
    w = w.at[40:72, 128:256].set(whh1)
    w = w.at[72:80, 0:N_EMB_ENC].set(conv_w)
    w = w.at[80:112, 0:N_PROJ_HID].set(p1_w)
    w = w.at[112:128, 0:N_TGT_PAD].set(p2_w_pad)

    # ---- single f32 bias slab (8, 128) ----
    b = jnp.zeros((8, 128), jnp.float32)
    b = b.at[0, :].set(b0[0])
    b = b.at[1, :].set(b1[0])
    b = b.at[2, 0:N_PROJ_HID].set(p1_b[0])
    b = b.at[3, 0:N_TGT_PAD].set(p2_b_pad[0])

    return {'w': w.astype(MXU_DTYPE), 'b': b}


if __name__ == "__main__":
    key = jax.random.PRNGKey(0)
    k_in, k_par = jax.random.split(key)
    inputs = jax.random.normal(k_in, (BATCH, T_IN, N_INPUTS), jnp.float32)
    params = init_params(k_par)

    all_outputs, (h_n, c_n), natural_params = encoder_forward(params, inputs)
    jax.block_until_ready((all_outputs, h_n, c_n, natural_params))

    L = T_IN // CONV_STRIDE
    assert all_outputs[0].shape == (L, BATCH, 2 * H_ENC), all_outputs[0].shape
    assert all_outputs[1].shape == (L, BATCH, 2 * H_ENC), all_outputs[1].shape
    assert h_n.shape == (2 * N_ENC_LAYERS, BATCH, H_ENC), h_n.shape
    assert c_n.shape == (2 * N_ENC_LAYERS, BATCH, H_ENC), c_n.shape
    assert natural_params['encoder_0_targets'].shape == (BATCH, L, N_TARGETS)
    leaves = jax.tree_util.tree_leaves((all_outputs, h_n, c_n, natural_params))
    assert all(bool(jnp.all(jnp.isfinite(x))) for x in leaves)
    print("KERNEL_OK")
</pallas_src>

<mosaic_0001>
module attributes {stable_mosaic.version = 11 : i64} {
  func.func @_encoder_kernel(%arg0: memref<64x8xf32, #tpu.memory_space<vmem>>, %arg1: memref<128x256xbf16, #tpu.memory_space<vmem>>, %arg2: memref<8x128xf32, #tpu.memory_space<vmem>>, %arg3: memref<64x128xf32, #tpu.memory_space<vmem>>) attributes {dimension_semantics = [], scalar_prefetch = 0 : i64, scratch_operands = 0 : i64, tpu.core_type = #tpu.core_type<tc>} {
    %c0 = arith.constant 0 : index
    %c0_0 = arith.constant 0 : index
    %0 = vector.load %arg1[%c0, %c0_0] : memref<128x256xbf16, #tpu.memory_space<vmem>>, vector<8x256xbf16>
    %c8 = arith.constant 8 : index
    %c0_1 = arith.constant 0 : index
    %1 = vector.load %arg1[%c8, %c0_1] : memref<128x256xbf16, #tpu.memory_space<vmem>>, vector<32x256xbf16>
    %c40 = arith.constant 40 : index
    %c0_2 = arith.constant 0 : index
    %2 = vector.load %arg1[%c40, %c0_2] : memref<128x256xbf16, #tpu.memory_space<vmem>>, vector<32x128xbf16>
    %c40_3 = arith.constant 40 : index
    %c128 = arith.constant 128 : index
    %3 = vector.load %arg1[%c40_3, %c128] : memref<128x256xbf16, #tpu.memory_space<vmem>>, vector<32x128xbf16>
    %c72 = arith.constant 72 : index
    %c0_4 = arith.constant 0 : index
    %4 = vector.load %arg1[%c72, %c0_4] : memref<128x256xbf16, #tpu.memory_space<vmem>>, vector<8x8xbf16>
    %c80 = arith.constant 80 : index
    %c0_5 = arith.constant 0 : index
    %5 = vector.load %arg1[%c80, %c0_5] : memref<128x256xbf16, #tpu.memory_space<vmem>>, vector<32x16xbf16>
    %c112 = arith.constant 112 : index
    %c0_6 = arith.constant 0 : index
    %6 = vector.load %arg1[%c112, %c0_6] : memref<128x256xbf16, #tpu.memory_space<vmem>>, vector<16x32xbf16>
    %c0_7 = arith.constant 0 : index
    %c0_8 = arith.constant 0 : index
    %7 = vector.load %arg2[%c0_7, %c0_8] : memref<8x128xf32, #tpu.memory_space<vmem>>, vector<1x128xf32>
    %c1 = arith.constant 1 : index
    %c0_9 = arith.constant 0 : index
    %8 = vector.load %arg2[%c1, %c0_9] : memref<8x128xf32, #tpu.memory_space<vmem>>, vector<1x128xf32>
    %c2 = arith.constant 2 : index
    %c0_10 = arith.constant 0 : index
    %9 = vector.load %arg2[%c2, %c0_10] : memref<8x128xf32, #tpu.memory_space<vmem>>, vector<1x16xf32>
    %c3 = arith.constant 3 : index
    %c0_11 = arith.constant 0 : index
    %10 = vector.load %arg2[%c3, %c0_11] : memref<8x128xf32, #tpu.memory_space<vmem>>, vector<1x32xf32>
    %11 = tpu.iota {dimensions = array<i32: 1>} : vector<8x32xi32>
    %c16_i32 = arith.constant 16 : i32
    %12 = vector.broadcast %c16_i32 : i32 to vector<8x32xi32>
    %13 = arith.cmpi slt, %11, %12 : vector<8x32xi32>
    %c0_12 = arith.constant 0 : index
    %c0_13 = arith.constant 0 : index
    %14 = vector.load %arg0[%c0_12, %c0_13] : memref<64x8xf32, #tpu.memory_space<vmem>>, vector<64x8xf32>
    %15 = arith.truncf %14 : vector<64x8xf32> to vector<64x8xbf16>
    %cst = arith.constant dense<0.000000e+00> : vector<64x8xf32>
    %16 = tpu.matmul %15, %4, %cst {dimension_numbers = #tpu.dot_dimension_numbers<[1], [0], [0], [1], [0, 0, 1, 1], [], []>} : vector<64x8xbf16>, vector<8x8xbf16>, vector<64x8xf32> -> vector<64x8xf32>
    %17 = arith.truncf %16 : vector<64x8xf32> to vector<64x8xbf16>
    %cst_14 = arith.constant dense<0.000000e+00> : vector<64x256xf32>
    %18 = tpu.matmul %17, %0, %cst_14 {dimension_numbers = #tpu.dot_dimension_numbers<[1], [0], [0], [1], [0, 0, 1, 1], [], []>} : vector<64x8xbf16>, vector<8x256xbf16>, vector<64x256xf32> -> vector<64x256xf32>
    %19 = vector.extract_strided_slice %18 {offsets = [0, 0], sizes = [64, 128], strides = [1, 1]} : vector<64x256xf32> to vector<64x128xf32>
    %20 = vector.broadcast %7 : vector<1x128xf32> to vector<64x128xf32>
    %21 = arith.addf %19, %20 : vector<64x128xf32>
    %22 = vector.extract_strided_slice %18 {offsets = [0, 128], sizes = [64, 128], strides = [1, 1]} : vector<64x256xf32> to vector<64x128xf32>
    %23 = vector.extract_strided_slice %21 {offsets = [56, 0], sizes = [8, 128], strides = [1, 1]} : vector<64x128xf32> to vector<8x128xf32>
    %24 = vector.extract_strided_slice %22 {offsets = [0, 0], sizes = [8, 128], strides = [1, 1]} : vector<64x128xf32> to vector<8x128xf32>
    %25 = arith.addf %23, %24 : vector<8x128xf32>
    %26 = vector.extract_strided_slice %21 {offsets = [48, 0], sizes = [8, 128], strides = [1, 1]} : vector<64x128xf32> to vector<8x128xf32>
    %27 = vector.extract_strided_slice %22 {offsets = [8, 0], sizes = [8, 128], strides = [1, 1]} : vector<64x128xf32> to vector<8x128xf32>
    %28 = arith.addf %26, %27 : vector<8x128xf32>
    %29 = vector.extract_strided_slice %21 {offsets = [40, 0], sizes = [8, 128], strides = [1, 1]} : vector<64x128xf32> to vector<8x128xf32>
    %30 = vector.extract_strided_slice %22 {offsets = [16, 0], sizes = [8, 128], strides = [1, 1]} : vector<64x128xf32> to vector<8x128xf32>
    %31 = arith.addf %29, %30 : vector<8x128xf32>
    %32 = vector.extract_strided_slice %21 {offsets = [32, 0], sizes = [8, 128], strides = [1, 1]} : vector<64x128xf32> to vector<8x128xf32>
    %33 = vector.extract_strided_slice %22 {offsets = [24, 0], sizes = [8, 128], strides = [1, 1]} : vector<64x128xf32> to vector<8x128xf32>
    %34 = arith.addf %32, %33 : vector<8x128xf32>
    %35 = vector.extract_strided_slice %21 {offsets = [24, 0], sizes = [8, 128], strides = [1, 1]} : vector<64x128xf32> to vector<8x128xf32>
    %36 = vector.extract_strided_slice %22 {offsets = [32, 0], sizes = [8, 128], strides = [1, 1]} : vector<64x128xf32> to vector<8x128xf32>
    %37 = arith.addf %35, %36 : vector<8x128xf32>
    %38 = vector.extract_strided_slice %21 {offsets = [16, 0], sizes = [8, 128], strides = [1, 1]} : vector<64x128xf32> to vector<8x128xf32>
    %39 = vector.extract_strided_slice %22 {offsets = [40, 0], sizes = [8, 128], strides = [1, 1]} : vector<64x128xf32> to vector<8x128xf32>
    %40 = arith.addf %38, %39 : vector<8x128xf32>
    %41 = vector.extract_strided_slice %21 {offsets = [8, 0], sizes = [8, 128], strides = [1, 1]} : vector<64x128xf32> to vector<8x128xf32>
    %42 = vector.extract_strided_slice %22 {offsets = [48, 0], sizes = [8, 128], strides = [1, 1]} : vector<64x128xf32> to vector<8x128xf32>
    %43 = arith.addf %41, %42 : vector<8x128xf32>
    %44 = vector.extract_strided_slice %21 {offsets = [0, 0], sizes = [8, 128], strides = [1, 1]} : vector<64x128xf32> to vector<8x128xf32>
    %45 = vector.extract_strided_slice %22 {offsets = [56, 0], sizes = [8, 128], strides = [1, 1]} : vector<64x128xf32> to vector<8x128xf32>
    %46 = arith.addf %44, %45 : vector<8x128xf32>
    %cst_15 = arith.constant 0.000000e+00 : f32
    %47 = vector.broadcast %cst_15 : f32 to vector<8x32xf32>
    %cst_16 = arith.constant 0.000000e+00 : f32
    %48 = vector.broadcast %cst_16 : f32 to vector<8x32xf32>
    %49 = arith.truncf %47 : vector<8x32xf32> to vector<8x32xbf16>
    %cst_17 = arith.constant dense<0.000000e+00> : vector<8x128xf32>
    %50 = tpu.matmul %49, %2, %cst_17 {dimension_numbers = #tpu.dot_dimension_numbers<[1], [0], [0], [1], [0, 0, 1, 1], [], []>} : vector<8x32xbf16>, vector<32x128xbf16>, vector<8x128xf32> -> vector<8x128xf32>
    %51 = arith.addf %25, %50 : vector<8x128xf32>
    %52 = arith.negf %51 : vector<8x128xf32>
    %53 = math.exp %52 : vector<8x128xf32>
    %cst_18 = arith.constant 1.000000e+00 : f32
    %54 = vector.broadcast %cst_18 : f32 to vector<8x128xf32>
    %55 = arith.addf %54, %53 : vector<8x128xf32>
    %56 = arith.divf %54, %55 : vector<8x128xf32>
    %57 = math.tanh %51 : vector<8x128xf32>
    %58 = vector.extract_strided_slice %56 {offsets = [0, 0], sizes = [8, 32], strides = [1, 1]} : vector<8x128xf32> to vector<8x32xf32>
    %59 = vector.extract_strided_slice %56 {offsets = [0, 32], sizes = [8, 32], strides = [1, 1]} : vector<8x128xf32> to vector<8x32xf32>
    %60 = vector.extract_strided_slice %57 {offsets = [0, 64], sizes = [8, 32], strides = [1, 1]} : vector<8x128xf32> to vector<8x32xf32>
    %61 = vector.extract_strided_slice %56 {offsets = [0, 96], sizes = [8, 32], strides = [1, 1]} : vector<8x128xf32> to vector<8x32xf32>
    %62 = arith.mulf %59, %48 : vector<8x32xf32>
    %63 = arith.mulf %58, %60 : vector<8x32xf32>
    %64 = arith.addf %62, %63 : vector<8x32xf32>
    %65 = math.tanh %64 : vector<8x32xf32>
    %66 = arith.mulf %61, %65 : vector<8x32xf32>
    %67 = arith.truncf %66 : vector<8x32xf32> to vector<8x32xbf16>
    %cst_19 = arith.constant dense<0.000000e+00> : vector<8x128xf32>
    %68 = tpu.matmul %67, %2, %cst_19 {dimension_numbers = #tpu.dot_dimension_numbers<[1], [0], [0], [1], [0, 0, 1, 1], [], []>} : vector<8x32xbf16>, vector<32x128xbf16>, vector<8x128xf32> -> vector<8x128xf32>
    %69 = arith.addf %28, %68 : vector<8x128xf32>
    %70 = arith.negf %69 : vector<8x128xf32>
    %71 = math.exp %70 : vector<8x128xf32>
    %cst_20 = arith.constant 1.000000e+00 : f32
    %72 = vector.broadcast %cst_20 : f32 to vector<8x128xf32>
    %73 = arith.addf %72, %71 : vector<8x128xf32>
    %74 = arith.divf %72, %73 : vector<8x128xf32>
    %75 = math.tanh %69 : vector<8x128xf32>
    %76 = vector.extract_strided_slice %74 {offsets = [0, 0], sizes = [8, 32], strides = [1, 1]} : vector<8x128xf32> to vector<8x32xf32>
    %77 = vector.extract_strided_slice %74 {offsets = [0, 32], sizes = [8, 32], strides = [1, 1]} : vector<8x128xf32> to vector<8x32xf32>
    %78 = vector.extract_strided_slice %75 {offsets = [0, 64], sizes = [8, 32], strides = [1, 1]} : vector<8x128xf32> to vector<8x32xf32>
    %79 = vector.extract_strided_slice %74 {offsets = [0, 96], sizes = [8, 32], strides = [1, 1]} : vector<8x128xf32> to vector<8x32xf32>
    %80 = arith.mulf %77, %64 : vector<8x32xf32>
    %81 = arith.mulf %76, %78 : vector<8x32xf32>
    %82 = arith.addf %80, %81 : vector<8x32xf32>
    %83 = math.tanh %82 : vector<8x32xf32>
    %84 = arith.mulf %79, %83 : vector<8x32xf32>
    %85 = arith.truncf %84 : vector<8x32xf32> to vector<8x32xbf16>
    %cst_21 = arith.constant dense<0.000000e+00> : vector<8x128xf32>
    %86 = tpu.matmul %85, %2, %cst_21 {dimension_numbers = #tpu.dot_dimension_numbers<[1], [0], [0], [1], [0, 0, 1, 1], [], []>} : vector<8x32xbf16>, vector<32x128xbf16>, vector<8x128xf32> -> vector<8x128xf32>
    %87 = arith.addf %31, %86 : vector<8x128xf32>
    %88 = arith.negf %87 : vector<8x128xf32>
    %89 = math.exp %88 : vector<8x128xf32>
    %cst_22 = arith.constant 1.000000e+00 : f32
    %90 = vector.broadcast %cst_22 : f32 to vector<8x128xf32>
    %91 = arith.addf %90, %89 : vector<8x128xf32>
    %92 = arith.divf %90, %91 : vector<8x128xf32>
    %93 = math.tanh %87 : vector<8x128xf32>
    %94 = vector.extract_strided_slice %92 {offsets = [0, 0], sizes = [8, 32], strides = [1, 1]} : vector<8x128xf32> to vector<8x32xf32>
    %95 = vector.extract_strided_slice %92 {offsets = [0, 32], sizes = [8, 32], strides = [1, 1]} : vector<8x128xf32> to vector<8x32xf32>
    %96 = vector.extract_strided_slice %93 {offsets = [0, 64], sizes = [8, 32], strides = [1, 1]} : vector<8x128xf32> to vector<8x32xf32>
    %97 = vector.extract_strided_slice %92 {offsets = [0, 96], sizes = [8, 32], strides = [1, 1]} : vector<8x128xf32> to vector<8x32xf32>
    %98 = arith.mulf %95, %82 : vector<8x32xf32>
    %99 = arith.mulf %94, %96 : vector<8x32xf32>
    %100 = arith.addf %98, %99 : vector<8x32xf32>
    %101 = math.tanh %100 : vector<8x32xf32>
    %102 = arith.mulf %97, %101 : vector<8x32xf32>
    %103 = arith.truncf %102 : vector<8x32xf32> to vector<8x32xbf16>
    %cst_23 = arith.constant dense<0.000000e+00> : vector<8x128xf32>
    %104 = tpu.matmul %103, %2, %cst_23 {dimension_numbers = #tpu.dot_dimension_numbers<[1], [0], [0], [1], [0, 0, 1, 1], [], []>} : vector<8x32xbf16>, vector<32x128xbf16>, vector<8x128xf32> -> vector<8x128xf32>
    %105 = arith.addf %34, %104 : vector<8x128xf32>
    %106 = arith.negf %105 : vector<8x128xf32>
    %107 = math.exp %106 : vector<8x128xf32>
    %cst_24 = arith.constant 1.000000e+00 : f32
    %108 = vector.broadcast %cst_24 : f32 to vector<8x128xf32>
    %109 = arith.addf %108, %107 : vector<8x128xf32>
    %110 = arith.divf %108, %109 : vector<8x128xf32>
    %111 = math.tanh %105 : vector<8x128xf32>
    %112 = vector.extract_strided_slice %110 {offsets = [0, 0], sizes = [8, 32], strides = [1, 1]} : vector<8x128xf32> to vector<8x32xf32>
    %113 = vector.extract_strided_slice %110 {offsets = [0, 32], sizes = [8, 32], strides = [1, 1]} : vector<8x128xf32> to vector<8x32xf32>
    %114 = vector.extract_strided_slice %111 {offsets = [0, 64], sizes = [8, 32], strides = [1, 1]} : vector<8x128xf32> to vector<8x32xf32>
    %115 = vector.extract_strided_slice %110 {offsets = [0, 96], sizes = [8, 32], strides = [1, 1]} : vector<8x128xf32> to vector<8x32xf32>
    %116 = arith.mulf %113, %100 : vector<8x32xf32>
    %117 = arith.mulf %112, %114 : vector<8x32xf32>
    %118 = arith.addf %116, %117 : vector<8x32xf32>
    %119 = math.tanh %118 : vector<8x32xf32>
    %120 = arith.mulf %115, %119 : vector<8x32xf32>
    %121 = arith.truncf %120 : vector<8x32xf32> to vector<8x32xbf16>
    %cst_25 = arith.constant dense<0.000000e+00> : vector<8x128xf32>
    %122 = tpu.matmul %121, %2, %cst_25 {dimension_numbers = #tpu.dot_dimension_numbers<[1], [0], [0], [1], [0, 0, 1, 1], [], []>} : vector<8x32xbf16>, vector<32x128xbf16>, vector<8x128xf32> -> vector<8x128xf32>
    %123 = arith.addf %37, %122 : vector<8x128xf32>
    %124 = arith.negf %123 : vector<8x128xf32>
    %125 = math.exp %124 : vector<8x128xf32>
    %cst_26 = arith.constant 1.000000e+00 : f32
    %126 = vector.broadcast %cst_26 : f32 to vector<8x128xf32>
    %127 = arith.addf %126, %125 : vector<8x128xf32>
    %128 = arith.divf %126, %127 : vector<8x128xf32>
    %129 = math.tanh %123 : vector<8x128xf32>
    %130 = vector.extract_strided_slice %128 {offsets = [0, 0], sizes = [8, 32], strides = [1, 1]} : vector<8x128xf32> to vector<8x32xf32>
    %131 = vector.extract_strided_slice %128 {offsets = [0, 32], sizes = [8, 32], strides = [1, 1]} : vector<8x128xf32> to vector<8x32xf32>
    %132 = vector.extract_strided_slice %129 {offsets = [0, 64], sizes = [8, 32], strides = [1, 1]} : vector<8x128xf32> to vector<8x32xf32>
    %133 = vector.extract_strided_slice %128 {offsets = [0, 96], sizes = [8, 32], strides = [1, 1]} : vector<8x128xf32> to vector<8x32xf32>
    %134 = arith.mulf %131, %118 : vector<8x32xf32>
    %135 = arith.mulf %130, %132 : vector<8x32xf32>
    %136 = arith.addf %134, %135 : vector<8x32xf32>
    %137 = math.tanh %136 : vector<8x32xf32>
    %138 = arith.mulf %133, %137 : vector<8x32xf32>
    %139 = arith.truncf %138 : vector<8x32xf32> to vector<8x32xbf16>
    %cst_27 = arith.constant dense<0.000000e+00> : vector<8x128xf32>
    %140 = tpu.matmul %139, %2, %cst_27 {dimension_numbers = #tpu.dot_dimension_numbers<[1], [0], [0], [1], [0, 0, 1, 1], [], []>} : vector<8x32xbf16>, vector<32x128xbf16>, vector<8x128xf32> -> vector<8x128xf32>
    %141 = arith.addf %40, %140 : vector<8x128xf32>
    %142 = arith.negf %141 : vector<8x128xf32>
    %143 = math.exp %142 : vector<8x128xf32>
    %cst_28 = arith.constant 1.000000e+00 : f32
    %144 = vector.broadcast %cst_28 : f32 to vector<8x128xf32>
    %145 = arith.addf %144, %143 : vector<8x128xf32>
    %146 = arith.divf %144, %145 : vector<8x128xf32>
    %147 = math.tanh %141 : vector<8x128xf32>
    %148 = vector.extract_strided_slice %146 {offsets = [0, 0], sizes = [8, 32], strides = [1, 1]} : vector<8x128xf32> to vector<8x32xf32>
    %149 = vector.extract_strided_slice %146 {offsets = [0, 32], sizes = [8, 32], strides = [1, 1]} : vector<8x128xf32> to vector<8x32xf32>
    %150 = vector.extract_strided_slice %147 {offsets = [0, 64], sizes = [8, 32], strides = [1, 1]} : vector<8x128xf32> to vector<8x32xf32>
    %151 = vector.extract_strided_slice %146 {offsets = [0, 96], sizes = [8, 32], strides = [1, 1]} : vector<8x128xf32> to vector<8x32xf32>
    %152 = arith.mulf %149, %136 : vector<8x32xf32>
    %153 = arith.mulf %148, %150 : vector<8x32xf32>
    %154 = arith.addf %152, %153 : vector<8x32xf32>
    %155 = math.tanh %154 : vector<8x32xf32>
    %156 = arith.mulf %151, %155 : vector<8x32xf32>
    %157 = arith.truncf %156 : vector<8x32xf32> to vector<8x32xbf16>
    %cst_29 = arith.constant dense<0.000000e+00> : vector<8x128xf32>
    %158 = tpu.matmul %157, %2, %cst_29 {dimension_numbers = #tpu.dot_dimension_numbers<[1], [0], [0], [1], [0, 0, 1, 1], [], []>} : vector<8x32xbf16>, vector<32x128xbf16>, vector<8x128xf32> -> vector<8x128xf32>
    %159 = arith.addf %43, %158 : vector<8x128xf32>
    %160 = arith.negf %159 : vector<8x128xf32>
    %161 = math.exp %160 : vector<8x128xf32>
    %cst_30 = arith.constant 1.000000e+00 : f32
    %162 = vector.broadcast %cst_30 : f32 to vector<8x128xf32>
    %163 = arith.addf %162, %161 : vector<8x128xf32>
    %164 = arith.divf %162, %163 : vector<8x128xf32>
    %165 = math.tanh %159 : vector<8x128xf32>
    %166 = vector.extract_strided_slice %164 {offsets = [0, 0], sizes = [8, 32], strides = [1, 1]} : vector<8x128xf32> to vector<8x32xf32>
    %167 = vector.extract_strided_slice %164 {offsets = [0, 32], sizes = [8, 32], strides = [1, 1]} : vector<8x128xf32> to vector<8x32xf32>
    %168 = vector.extract_strided_slice %165 {offsets = [0, 64], sizes = [8, 32], strides = [1, 1]} : vector<8x128xf32> to vector<8x32xf32>
    %169 = vector.extract_strided_slice %164 {offsets = [0, 96], sizes = [8, 32], strides = [1, 1]} : vector<8x128xf32> to vector<8x32xf32>
    %170 = arith.mulf %167, %154 : vector<8x32xf32>
    %171 = arith.mulf %166, %168 : vector<8x32xf32>
    %172 = arith.addf %170, %171 : vector<8x32xf32>
    %173 = math.tanh %172 : vector<8x32xf32>
    %174 = arith.mulf %169, %173 : vector<8x32xf32>
    %175 = arith.truncf %174 : vector<8x32xf32> to vector<8x32xbf16>
    %cst_31 = arith.constant dense<0.000000e+00> : vector<8x128xf32>
    %176 = tpu.matmul %175, %2, %cst_31 {dimension_numbers = #tpu.dot_dimension_numbers<[1], [0], [0], [1], [0, 0, 1, 1], [], []>} : vector<8x32xbf16>, vector<32x128xbf16>, vector<8x128xf32> -> vector<8x128xf32>
    %177 = arith.addf %46, %176 : vector<8x128xf32>
    %178 = arith.negf %177 : vector<8x128xf32>
    %179 = math.exp %178 : vector<8x128xf32>
    %cst_32 = arith.constant 1.000000e+00 : f32
    %180 = vector.broadcast %cst_32 : f32 to vector<8x128xf32>
    %181 = arith.addf %180, %179 : vector<8x128xf32>
    %182 = arith.divf %180, %181 : vector<8x128xf32>
    %183 = math.tanh %177 : vector<8x128xf32>
    %184 = vector.extract_strided_slice %182 {offsets = [0, 0], sizes = [8, 32], strides = [1, 1]} : vector<8x128xf32> to vector<8x32xf32>
    %185 = vector.extract_strided_slice %182 {offsets = [0, 32], sizes = [8, 32], strides = [1, 1]} : vector<8x128xf32> to vector<8x32xf32>
    %186 = vector.extract_strided_slice %183 {offsets = [0, 64], sizes = [8, 32], strides = [1, 1]} : vector<8x128xf32> to vector<8x32xf32>
    %187 = vector.extract_strided_slice %182 {offsets = [0, 96], sizes = [8, 32], strides = [1, 1]} : vector<8x128xf32> to vector<8x32xf32>
    %188 = arith.mulf %185, %172 : vector<8x32xf32>
    %189 = arith.mulf %184, %186 : vector<8x32xf32>
    %190 = arith.addf %188, %189 : vector<8x32xf32>
    %191 = math.tanh %190 : vector<8x32xf32>
    %192 = arith.mulf %187, %191 : vector<8x32xf32>
    %193 = arith.select %13, %66, %192 : vector<8x32xi1>, vector<8x32xf32>
    %194 = arith.select %13, %84, %174 : vector<8x32xi1>, vector<8x32xf32>
    %195 = arith.select %13, %102, %156 : vector<8x32xi1>, vector<8x32xf32>
    %196 = arith.select %13, %120, %138 : vector<8x32xi1>, vector<8x32xf32>
    %197 = arith.select %13, %138, %120 : vector<8x32xi1>, vector<8x32xf32>
    %198 = arith.select %13, %156, %102 : vector<8x32xi1>, vector<8x32xf32>
    %199 = arith.select %13, %174, %84 : vector<8x32xi1>, vector<8x32xf32>
    %200 = arith.select %13, %192, %66 : vector<8x32xi1>, vector<8x32xf32>
    %201 = tpu.concatenate %193, %194, %195, %196, %197, %198, %199, %200 in 0 : vector<8x32xf32>, vector<8x32xf32>, vector<8x32xf32>, vector<8x32xf32>, vector<8x32xf32>, vector<8x32xf32>, vector<8x32xf32>, vector<8x32xf32> -> vector<64x32xf32>
    %202 = arith.truncf %201 : vector<64x32xf32> to vector<64x32xbf16>
    %cst_33 = arith.constant dense<0.000000e+00> : vector<64x256xf32>
    %203 = tpu.matmul %202, %1, %cst_33 {dimension_numbers = #tpu.dot_dimension_numbers<[1], [0], [0], [1], [0, 0, 1, 1], [], []>} : vector<64x32xbf16>, vector<32x256xbf16>, vector<64x256xf32> -> vector<64x256xf32>
    %204 = vector.extract_strided_slice %203 {offsets = [0, 0], sizes = [64, 128], strides = [1, 1]} : vector<64x256xf32> to vector<64x128xf32>
    %205 = vector.broadcast %8 : vector<1x128xf32> to vector<64x128xf32>
    %206 = arith.addf %204, %205 : vector<64x128xf32>
    %207 = vector.extract_strided_slice %203 {offsets = [0, 128], sizes = [64, 128], strides = [1, 1]} : vector<64x256xf32> to vector<64x128xf32>
    %208 = vector.extract_strided_slice %206 {offsets = [0, 0], sizes = [8, 128], strides = [1, 1]} : vector<64x128xf32> to vector<8x128xf32>
    %209 = vector.extract_strided_slice %207 {offsets = [56, 0], sizes = [8, 128], strides = [1, 1]} : vector<64x128xf32> to vector<8x128xf32>
    %210 = arith.addf %208, %209 : vector<8x128xf32>
    %211 = vector.extract_strided_slice %206 {offsets = [8, 0], sizes = [8, 128], strides = [1, 1]} : vector<64x128xf32> to vector<8x128xf32>
    %212 = vector.extract_strided_slice %207 {offsets = [48, 0], sizes = [8, 128], strides = [1, 1]} : vector<64x128xf32> to vector<8x128xf32>
    %213 = arith.addf %211, %212 : vector<8x128xf32>
    %214 = vector.extract_strided_slice %206 {offsets = [16, 0], sizes = [8, 128], strides = [1, 1]} : vector<64x128xf32> to vector<8x128xf32>
    %215 = vector.extract_strided_slice %207 {offsets = [40, 0], sizes = [8, 128], strides = [1, 1]} : vector<64x128xf32> to vector<8x128xf32>
    %216 = arith.addf %214, %215 : vector<8x128xf32>
    %217 = vector.extract_strided_slice %206 {offsets = [24, 0], sizes = [8, 128], strides = [1, 1]} : vector<64x128xf32> to vector<8x128xf32>
    %218 = vector.extract_strided_slice %207 {offsets = [32, 0], sizes = [8, 128], strides = [1, 1]} : vector<64x128xf32> to vector<8x128xf32>
    %219 = arith.addf %217, %218 : vector<8x128xf32>
    %220 = vector.extract_strided_slice %206 {offsets = [32, 0], sizes = [8, 128], strides = [1, 1]} : vector<64x128xf32> to vector<8x128xf32>
    %221 = vector.extract_strided_slice %207 {offsets = [24, 0], sizes = [8, 128], strides = [1, 1]} : vector<64x128xf32> to vector<8x128xf32>
    %222 = arith.addf %220, %221 : vector<8x128xf32>
    %223 = vector.extract_strided_slice %206 {offsets = [40, 0], sizes = [8, 128], strides = [1, 1]} : vector<64x128xf32> to vector<8x128xf32>
    %224 = vector.extract_strided_slice %207 {offsets = [16, 0], sizes = [8, 128], strides = [1, 1]} : vector<64x128xf32> to vector<8x128xf32>
    %225 = arith.addf %223, %224 : vector<8x128xf32>
    %226 = vector.extract_strided_slice %206 {offsets = [48, 0], sizes = [8, 128], strides = [1, 1]} : vector<64x128xf32> to vector<8x128xf32>
    %227 = vector.extract_strided_slice %207 {offsets = [8, 0], sizes = [8, 128], strides = [1, 1]} : vector<64x128xf32> to vector<8x128xf32>
    %228 = arith.addf %226, %227 : vector<8x128xf32>
    %229 = vector.extract_strided_slice %206 {offsets = [56, 0], sizes = [8, 128], strides = [1, 1]} : vector<64x128xf32> to vector<8x128xf32>
    %230 = vector.extract_strided_slice %207 {offsets = [0, 0], sizes = [8, 128], strides = [1, 1]} : vector<64x128xf32> to vector<8x128xf32>
    %231 = arith.addf %229, %230 : vector<8x128xf32>
    %cst_34 = arith.constant 0.000000e+00 : f32
    %232 = vector.broadcast %cst_34 : f32 to vector<8x32xf32>
    %cst_35 = arith.constant 0.000000e+00 : f32
    %233 = vector.broadcast %cst_35 : f32 to vector<8x32xf32>
    %234 = arith.truncf %232 : vector<8x32xf32> to vector<8x32xbf16>
    %cst_36 = arith.constant dense<0.000000e+00> : vector<8x128xf32>
    %235 = tpu.matmul %234, %3, %cst_36 {dimension_numbers = #tpu.dot_dimension_numbers<[1], [0], [0], [1], [0, 0, 1, 1], [], []>} : vector<8x32xbf16>, vector<32x128xbf16>, vector<8x128xf32> -> vector<8x128xf32>
    %236 = arith.addf %210, %235 : vector<8x128xf32>
    %237 = arith.negf %236 : vector<8x128xf32>
    %238 = math.exp %237 : vector<8x128xf32>
    %cst_37 = arith.constant 1.000000e+00 : f32
    %239 = vector.broadcast %cst_37 : f32 to vector<8x128xf32>
    %240 = arith.addf %239, %238 : vector<8x128xf32>
    %241 = arith.divf %239, %240 : vector<8x128xf32>
    %242 = math.tanh %236 : vector<8x128xf32>
    %243 = vector.extract_strided_slice %241 {offsets = [0, 0], sizes = [8, 32], strides = [1, 1]} : vector<8x128xf32> to vector<8x32xf32>
    %244 = vector.extract_strided_slice %241 {offsets = [0, 32], sizes = [8, 32], strides = [1, 1]} : vector<8x128xf32> to vector<8x32xf32>
    %245 = vector.extract_strided_slice %242 {offsets = [0, 64], sizes = [8, 32], strides = [1, 1]} : vector<8x128xf32> to vector<8x32xf32>
    %246 = vector.extract_strided_slice %241 {offsets = [0, 96], sizes = [8, 32], strides = [1, 1]} : vector<8x128xf32> to vector<8x32xf32>
    %247 = arith.mulf %244, %233 : vector<8x32xf32>
    %248 = arith.mulf %243, %245 : vector<8x32xf32>
    %249 = arith.addf %247, %248 : vector<8x32xf32>
    %250 = math.tanh %249 : vector<8x32xf32>
    %251 = arith.mulf %246, %250 : vector<8x32xf32>
    %252 = arith.truncf %251 : vector<8x32xf32> to vector<8x32xbf16>
    %cst_38 = arith.constant dense<0.000000e+00> : vector<8x128xf32>
    %253 = tpu.matmul %252, %3, %cst_38 {dimension_numbers = #tpu.dot_dimension_numbers<[1], [0], [0], [1], [0, 0, 1, 1], [], []>} : vector<8x32xbf16>, vector<32x128xbf16>, vector<8x128xf32> -> vector<8x128xf32>
    %254 = arith.addf %213, %253 : vector<8x128xf32>
    %255 = arith.negf %254 : vector<8x128xf32>
    %256 = math.exp %255 : vector<8x128xf32>
    %cst_39 = arith.constant 1.000000e+00 : f32
    %257 = vector.broadcast %cst_39 : f32 to vector<8x128xf32>
    %258 = arith.addf %257, %256 : vector<8x128xf32>
    %259 = arith.divf %257, %258 : vector<8x128xf32>
    %260 = math.tanh %254 : vector<8x128xf32>
    %261 = vector.extract_strided_slice %259 {offsets = [0, 0], sizes = [8, 32], strides = [1, 1]} : vector<8x128xf32> to vector<8x32xf32>
    %262 = vector.extract_strided_slice %259 {offsets = [0, 32], sizes = [8, 32], strides = [1, 1]} : vector<8x128xf32> to vector<8x32xf32>
    %263 = vector.extract_strided_slice %260 {offsets = [0, 64], sizes = [8, 32], strides = [1, 1]} : vector<8x128xf32> to vector<8x32xf32>
    %264 = vector.extract_strided_slice %259 {offsets = [0, 96], sizes = [8, 32], strides = [1, 1]} : vector<8x128xf32> to vector<8x32xf32>
    %265 = arith.mulf %262, %249 : vector<8x32xf32>
    %266 = arith.mulf %261, %263 : vector<8x32xf32>
    %267 = arith.addf %265, %266 : vector<8x32xf32>
    %268 = math.tanh %267 : vector<8x32xf32>
    %269 = arith.mulf %264, %268 : vector<8x32xf32>
    %270 = arith.truncf %269 : vector<8x32xf32> to vector<8x32xbf16>
    %cst_40 = arith.constant dense<0.000000e+00> : vector<8x128xf32>
    %271 = tpu.matmul %270, %3, %cst_40 {dimension_numbers = #tpu.dot_dimension_numbers<[1], [0], [0], [1], [0, 0, 1, 1], [], []>} : vector<8x32xbf16>, vector<32x128xbf16>, vector<8x128xf32> -> vector<8x128xf32>
    %272 = arith.addf %216, %271 : vector<8x128xf32>
    %273 = arith.negf %272 : vector<8x128xf32>
    %274 = math.exp %273 : vector<8x128xf32>
    %cst_41 = arith.constant 1.000000e+00 : f32
    %275 = vector.broadcast %cst_41 : f32 to vector<8x128xf32>
    %276 = arith.addf %275, %274 : vector<8x128xf32>
    %277 = arith.divf %275, %276 : vector<8x128xf32>
    %278 = math.tanh %272 : vector<8x128xf32>
    %279 = vector.extract_strided_slice %277 {offsets = [0, 0], sizes = [8, 32], strides = [1, 1]} : vector<8x128xf32> to vector<8x32xf32>
    %280 = vector.extract_strided_slice %277 {offsets = [0, 32], sizes = [8, 32], strides = [1, 1]} : vector<8x128xf32> to vector<8x32xf32>
    %281 = vector.extract_strided_slice %278 {offsets = [0, 64], sizes = [8, 32], strides = [1, 1]} : vector<8x128xf32> to vector<8x32xf32>
    %282 = vector.extract_strided_slice %277 {offsets = [0, 96], sizes = [8, 32], strides = [1, 1]} : vector<8x128xf32> to vector<8x32xf32>
    %283 = arith.mulf %280, %267 : vector<8x32xf32>
    %284 = arith.mulf %279, %281 : vector<8x32xf32>
    %285 = arith.addf %283, %284 : vector<8x32xf32>
    %286 = math.tanh %285 : vector<8x32xf32>
    %287 = arith.mulf %282, %286 : vector<8x32xf32>
    %288 = arith.truncf %287 : vector<8x32xf32> to vector<8x32xbf16>
    %cst_42 = arith.constant dense<0.000000e+00> : vector<8x128xf32>
    %289 = tpu.matmul %288, %3, %cst_42 {dimension_numbers = #tpu.dot_dimension_numbers<[1], [0], [0], [1], [0, 0, 1, 1], [], []>} : vector<8x32xbf16>, vector<32x128xbf16>, vector<8x128xf32> -> vector<8x128xf32>
    %290 = arith.addf %219, %289 : vector<8x128xf32>
    %291 = arith.negf %290 : vector<8x128xf32>
    %292 = math.exp %291 : vector<8x128xf32>
    %cst_43 = arith.constant 1.000000e+00 : f32
    %293 = vector.broadcast %cst_43 : f32 to vector<8x128xf32>
    %294 = arith.addf %293, %292 : vector<8x128xf32>
    %295 = arith.divf %293, %294 : vector<8x128xf32>
    %296 = math.tanh %290 : vector<8x128xf32>
    %297 = vector.extract_strided_slice %295 {offsets = [0, 0], sizes = [8, 32], strides = [1, 1]} : vector<8x128xf32> to vector<8x32xf32>
    %298 = vector.extract_strided_slice %295 {offsets = [0, 32], sizes = [8, 32], strides = [1, 1]} : vector<8x128xf32> to vector<8x32xf32>
    %299 = vector.extract_strided_slice %296 {offsets = [0, 64], sizes = [8, 32], strides = [1, 1]} : vector<8x128xf32> to vector<8x32xf32>
    %300 = vector.extract_strided_slice %295 {offsets = [0, 96], sizes = [8, 32], strides = [1, 1]} : vector<8x128xf32> to vector<8x32xf32>
    %301 = arith.mulf %298, %285 : vector<8x32xf32>
    %302 = arith.mulf %297, %299 : vector<8x32xf32>
    %303 = arith.addf %301, %302 : vector<8x32xf32>
    %304 = math.tanh %303 : vector<8x32xf32>
    %305 = arith.mulf %300, %304 : vector<8x32xf32>
    %306 = arith.truncf %305 : vector<8x32xf32> to vector<8x32xbf16>
    %cst_44 = arith.constant dense<0.000000e+00> : vector<8x128xf32>
    %307 = tpu.matmul %306, %3, %cst_44 {dimension_numbers = #tpu.dot_dimension_numbers<[1], [0], [0], [1], [0, 0, 1, 1], [], []>} : vector<8x32xbf16>, vector<32x128xbf16>, vector<8x128xf32> -> vector<8x128xf32>
    %308 = arith.addf %222, %307 : vector<8x128xf32>
    %309 = arith.negf %308 : vector<8x128xf32>
    %310 = math.exp %309 : vector<8x128xf32>
    %cst_45 = arith.constant 1.000000e+00 : f32
    %311 = vector.broadcast %cst_45 : f32 to vector<8x128xf32>
    %312 = arith.addf %311, %310 : vector<8x128xf32>
    %313 = arith.divf %311, %312 : vector<8x128xf32>
    %314 = math.tanh %308 : vector<8x128xf32>
    %315 = vector.extract_strided_slice %313 {offsets = [0, 0], sizes = [8, 32], strides = [1, 1]} : vector<8x128xf32> to vector<8x32xf32>
    %316 = vector.extract_strided_slice %313 {offsets = [0, 32], sizes = [8, 32], strides = [1, 1]} : vector<8x128xf32> to vector<8x32xf32>
    %317 = vector.extract_strided_slice %314 {offsets = [0, 64], sizes = [8, 32], strides = [1, 1]} : vector<8x128xf32> to vector<8x32xf32>
    %318 = vector.extract_strided_slice %313 {offsets = [0, 96], sizes = [8, 32], strides = [1, 1]} : vector<8x128xf32> to vector<8x32xf32>
    %319 = arith.mulf %316, %303 : vector<8x32xf32>
    %320 = arith.mulf %315, %317 : vector<8x32xf32>
    %321 = arith.addf %319, %320 : vector<8x32xf32>
    %322 = math.tanh %321 : vector<8x32xf32>
    %323 = arith.mulf %318, %322 : vector<8x32xf32>
    %324 = arith.truncf %323 : vector<8x32xf32> to vector<8x32xbf16>
    %cst_46 = arith.constant dense<0.000000e+00> : vector<8x128xf32>
    %325 = tpu.matmul %324, %3, %cst_46 {dimension_numbers = #tpu.dot_dimension_numbers<[1], [0], [0], [1], [0, 0, 1, 1], [], []>} : vector<8x32xbf16>, vector<32x128xbf16>, vector<8x128xf32> -> vector<8x128xf32>
    %326 = arith.addf %225, %325 : vector<8x128xf32>
    %327 = arith.negf %326 : vector<8x128xf32>
    %328 = math.exp %327 : vector<8x128xf32>
    %cst_47 = arith.constant 1.000000e+00 : f32
    %329 = vector.broadcast %cst_47 : f32 to vector<8x128xf32>
    %330 = arith.addf %329, %328 : vector<8x128xf32>
    %331 = arith.divf %329, %330 : vector<8x128xf32>
    %332 = math.tanh %326 : vector<8x128xf32>
    %333 = vector.extract_strided_slice %331 {offsets = [0, 0], sizes = [8, 32], strides = [1, 1]} : vector<8x128xf32> to vector<8x32xf32>
    %334 = vector.extract_strided_slice %331 {offsets = [0, 32], sizes = [8, 32], strides = [1, 1]} : vector<8x128xf32> to vector<8x32xf32>
    %335 = vector.extract_strided_slice %332 {offsets = [0, 64], sizes = [8, 32], strides = [1, 1]} : vector<8x128xf32> to vector<8x32xf32>
    %336 = vector.extract_strided_slice %331 {offsets = [0, 96], sizes = [8, 32], strides = [1, 1]} : vector<8x128xf32> to vector<8x32xf32>
    %337 = arith.mulf %334, %321 : vector<8x32xf32>
    %338 = arith.mulf %333, %335 : vector<8x32xf32>
    %339 = arith.addf %337, %338 : vector<8x32xf32>
    %340 = math.tanh %339 : vector<8x32xf32>
    %341 = arith.mulf %336, %340 : vector<8x32xf32>
    %342 = arith.truncf %341 : vector<8x32xf32> to vector<8x32xbf16>
    %cst_48 = arith.constant dense<0.000000e+00> : vector<8x128xf32>
    %343 = tpu.matmul %342, %3, %cst_48 {dimension_numbers = #tpu.dot_dimension_numbers<[1], [0], [0], [1], [0, 0, 1, 1], [], []>} : vector<8x32xbf16>, vector<32x128xbf16>, vector<8x128xf32> -> vector<8x128xf32>
    %344 = arith.addf %228, %343 : vector<8x128xf32>
    %345 = arith.negf %344 : vector<8x128xf32>
    %346 = math.exp %345 : vector<8x128xf32>
    %cst_49 = arith.constant 1.000000e+00 : f32
    %347 = vector.broadcast %cst_49 : f32 to vector<8x128xf32>
    %348 = arith.addf %347, %346 : vector<8x128xf32>
    %349 = arith.divf %347, %348 : vector<8x128xf32>
    %350 = math.tanh %344 : vector<8x128xf32>
    %351 = vector.extract_strided_slice %349 {offsets = [0, 0], sizes = [8, 32], strides = [1, 1]} : vector<8x128xf32> to vector<8x32xf32>
    %352 = vector.extract_strided_slice %349 {offsets = [0, 32], sizes = [8, 32], strides = [1, 1]} : vector<8x128xf32> to vector<8x32xf32>
    %353 = vector.extract_strided_slice %350 {offsets = [0, 64], sizes = [8, 32], strides = [1, 1]} : vector<8x128xf32> to vector<8x32xf32>
    %354 = vector.extract_strided_slice %349 {offsets = [0, 96], sizes = [8, 32], strides = [1, 1]} : vector<8x128xf32> to vector<8x32xf32>
    %355 = arith.mulf %352, %339 : vector<8x32xf32>
    %356 = arith.mulf %351, %353 : vector<8x32xf32>
    %357 = arith.addf %355, %356 : vector<8x32xf32>
    %358 = math.tanh %357 : vector<8x32xf32>
    %359 = arith.mulf %354, %358 : vector<8x32xf32>
    %360 = arith.truncf %359 : vector<8x32xf32> to vector<8x32xbf16>
    %cst_50 = arith.constant dense<0.000000e+00> : vector<8x128xf32>
    %361 = tpu.matmul %360, %3, %cst_50 {dimension_numbers = #tpu.dot_dimension_numbers<[1], [0], [0], [1], [0, 0, 1, 1], [], []>} : vector<8x32xbf16>, vector<32x128xbf16>, vector<8x128xf32> -> vector<8x128xf32>
    %362 = arith.addf %231, %361 : vector<8x128xf32>
    %363 = arith.negf %362 : vector<8x128xf32>
    %364 = math.exp %363 : vector<8x128xf32>
    %cst_51 = arith.constant 1.000000e+00 : f32
    %365 = vector.broadcast %cst_51 : f32 to vector<8x128xf32>
    %366 = arith.addf %365, %364 : vector<8x128xf32>
    %367 = arith.divf %365, %366 : vector<8x128xf32>
    %368 = math.tanh %362 : vector<8x128xf32>
    %369 = vector.extract_strided_slice %367 {offsets = [0, 0], sizes = [8, 32], strides = [1, 1]} : vector<8x128xf32> to vector<8x32xf32>
    %370 = vector.extract_strided_slice %367 {offsets = [0, 32], sizes = [8, 32], strides = [1, 1]} : vector<8x128xf32> to vector<8x32xf32>
    %371 = vector.extract_strided_slice %368 {offsets = [0, 64], sizes = [8, 32], strides = [1, 1]} : vector<8x128xf32> to vector<8x32xf32>
    %372 = vector.extract_strided_slice %367 {offsets = [0, 96], sizes = [8, 32], strides = [1, 1]} : vector<8x128xf32> to vector<8x32xf32>
    %373 = arith.mulf %370, %357 : vector<8x32xf32>
    %374 = arith.mulf %369, %371 : vector<8x32xf32>
    %375 = arith.addf %373, %374 : vector<8x32xf32>
    %376 = math.tanh %375 : vector<8x32xf32>
    %377 = arith.mulf %372, %376 : vector<8x32xf32>
    %378 = arith.select %13, %251, %377 : vector<8x32xi1>, vector<8x32xf32>
    %379 = arith.select %13, %269, %359 : vector<8x32xi1>, vector<8x32xf32>
    %380 = arith.select %13, %287, %341 : vector<8x32xi1>, vector<8x32xf32>
    %381 = arith.select %13, %305, %323 : vector<8x32xi1>, vector<8x32xf32>
    %382 = arith.select %13, %323, %305 : vector<8x32xi1>, vector<8x32xf32>
    %383 = arith.select %13, %341, %287 : vector<8x32xi1>, vector<8x32xf32>
    %384 = arith.select %13, %359, %269 : vector<8x32xi1>, vector<8x32xf32>
    %385 = arith.select %13, %377, %251 : vector<8x32xi1>, vector<8x32xf32>
    %386 = tpu.concatenate %378, %379, %380, %381, %382, %383, %384, %385 in 0 : vector<8x32xf32>, vector<8x32xf32>, vector<8x32xf32>, vector<8x32xf32>, vector<8x32xf32>, vector<8x32xf32>, vector<8x32xf32>, vector<8x32xf32> -> vector<64x32xf32>
    %387 = arith.truncf %201 : vector<64x32xf32> to vector<64x32xbf16>
    %cst_52 = arith.constant dense<0.000000e+00> : vector<64x16xf32>
    %388 = tpu.matmul %387, %5, %cst_52 {dimension_numbers = #tpu.dot_dimension_numbers<[1], [0], [0], [1], [0, 0, 1, 1], [], []>} : vector<64x32xbf16>, vector<32x16xbf16>, vector<64x16xf32> -> vector<64x16xf32>
    %389 = vector.broadcast %9 : vector<1x16xf32> to vector<64x16xf32>
    %390 = arith.addf %388, %389 : vector<64x16xf32>
    %cst_53 = arith.constant 0.000000e+00 : f32
    %391 = vector.broadcast %cst_53 : f32 to vector<64x16xf32>
    %392 = arith.maximumf %390, %391 : vector<64x16xf32>
    %393 = arith.truncf %392 : vector<64x16xf32> to vector<64x16xbf16>
    %cst_54 = arith.constant dense<0.000000e+00> : vector<64x32xf32>
    %394 = tpu.matmul %393, %6, %cst_54 {dimension_numbers = #tpu.dot_dimension_numbers<[1], [0], [0], [1], [0, 0, 1, 1], [], []>} : vector<64x16xbf16>, vector<16x32xbf16>, vector<64x32xf32> -> vector<64x32xf32>
    %395 = vector.broadcast %10 : vector<1x32xf32> to vector<64x32xf32>
    %396 = arith.addf %394, %395 : vector<64x32xf32>
    %397 = tpu.concatenate %192, %190, %377, %375 in 0 : vector<8x32xf32>, vector<8x32xf32>, vector<8x32xf32>, vector<8x32xf32> -> vector<32x32xf32>
    %cst_55 = arith.constant 0.000000e+00 : f32
    %398 = vector.broadcast %cst_55 : f32 to vector<32x32xf32>
    %399 = tpu.concatenate %397, %398 in 0 : vector<32x32xf32>, vector<32x32xf32> -> vector<64x32xf32>
    %400 = tpu.concatenate %201, %386, %396, %399 in 1 : vector<64x32xf32>, vector<64x32xf32>, vector<64x32xf32>, vector<64x32xf32> -> vector<64x128xf32>
    %c0_56 = arith.constant 0 : index
    %c0_57 = arith.constant 0 : index
    %401 = vector.load %arg3[%c0_56, %c0_57] : memref<64x128xf32, #tpu.memory_space<vmem>>, vector<64x128xf32>
    tpu.vector_store %arg3[%c0_56, %c0_57], %400 {strides = array<i32>} : memref<64x128xf32, #tpu.memory_space<vmem>>, vector<64x128xf32>,
    return
  }
}

</mosaic_0001>

<bundles_post_ra>
// kernel: encoder_forward.1
= control target key start
LH: loop header
LB: loop body
LE: loop exit
PB: predicated region body
PF: predicated region fallthrough
CT: control target
= control target key end

     0   :  { %vm67_vm0 = vcmask 1043456   ;;  %vm54_vm1 = vcmask 64512   ;;  %v2363_v18 = vmov 0   ;;  %v2364_v20 = vmov 0.0   ;;  %s2366_s10 = smov 64   ;;  %s2367_s11 = smov 32   ;;  %s2946_s1 = inlined_call_operand.vmem [shape: bf16[128,256], index: 1, kind: input, shape index: {}]   ;;  %s2947_s0 = inlined_call_operand.vmem [shape: f32[64,8], index: 0, kind: input, shape index: {}]   ;;  %s2948_s2 = inlined_call_operand.vmem [shape: f32[8,128], index: 2, kind: input, shape index: {}]   ;;  %s2949_s3 = inlined_call_operand.vmem [shape: f32[64,128], index: 3, kind: output, shape index: {}]  }
   0x1   :  { %v28_v0 = vld [vmem:[%s2946_s1 + $0x48] sm:$0xf]  ;;  %v42_v1 = vld [vmem:[%s2947_s0] sm:$0xff]  ;;  %v44_v5 = vld [vmem:[%s2947_s0 + $0x10] sm:$0xff]  ;;  %195 = vmatprep.mubr.bf16.mxu1 %v2363_v18  ;;  %vm2365_vm2 = vmmov 0   ;;  %vm268_vm3 = vcmask 261120  }
   0x2   :  { %v43_v2 = vld [vmem:[%s2947_s0 + $0x8] sm:$0xff]  ;;  %2214 = vmatprep.subr.msk.bf16.mxu0 %vm67_vm0, %v28_v0  ;;  %v69_v3 = vsel %vm67_vm0, %v28_v0, 0  ;;  %v45_v6 = vld [vmem:[%s2947_s0 + $0x18] sm:$0xff]  ;;  %v46_v7 = vld [vmem:[%s2947_s0 + $0x20] sm:$0xff]  ;;  %vm1734_vm5 = vcmask 130048   ;;  %vm1901_vm6 = vcmask 785408  }
   0x3   :  { %v50_v4 = vpack.c.bf16 %v43_v2, %v42_v1  ;;  %2055 = vmatpush3.bf16.msra.mxu0 %v69_v3  ;;  %v51_v8 = vpack.c.bf16 %v45_v6, %v44_v5  ;;  %v47_v9 = vld [vmem:[%s2947_s0 + $0x28] sm:$0xff]  ;;  %v48_v11 = vld [vmem:[%s2947_s0 + $0x30] sm:$0xff]  ;;  %v49_v12 = vld [vmem:[%s2947_s0 + $0x38] sm:$0xff]  ;;  %vm1892_vm7 = vcmask 523264  }
   0x4   :  { %v52_v10 = vpack.c.bf16 %v47_v9, %v46_v7  ;;  %v53_v13 = vpack.c.bf16 %v49_v12, %v48_v11  ;;  %v15_v14 = vld [vmem:[%s2946_s1] sm:$0xff]  ;;  %v2430_v19 = vld [vmem:[%s2946_s1 + $0x28] ss:$8 sps:$4 sm:$0xff]   ;;  %2064 = vmatprep.subr.bf16.mxu0 %v2364_v20 }
   0x5   :  { %2056 = vmatprep.mubr.msk.bf16.mxu0 %vm54_vm1, %v50_v4  ;;  %v1927_v15 = vcombine.high %v15_v14, %v15_v14  ;;  %v1926_v16 = vcombine.low %v15_v14, %v15_v14  ;;  %v2439_v21 = vld [vmem:[%s2946_s1 + $0x38] ss:$8 sps:$4 sm:$0xff]  }
   0x6   :  { %2057 = vmatmul.mubr.msk.bf16.vlgmr.msra.gmra.mrb[0].mxu0 %vm54_vm1, %v51_v8  ;;  %v1933_v38 = vld [vmem:[%s2948_s2] ss:$0 sm:$0xff] }
   0x7   :  { %2060 = vmatprep.mubr.msk.bf16.mxu0 %vm54_vm1, %v52_v10  ;;  %1928 = vmatprep.subr.msk.bf16.mxu1 %vm67_vm0, %v1927_v15  ;;  %v158_v17 = vsel %vm67_vm0, %v1926_v16, 0 }
   0x8   :  { %164 = vmatpush1.bf16.msra.mxu1 %v158_v17  ;;  %2065 = vmatpush3.bf16.msra.mxu0 %v2430_v19 }
   0x9   :  { %2088 = vmatprep.subr.bf16.mxu1 %v2364_v20  ;;  %2066 = vmatprep.subr.bf16.mxu0 %v2364_v20 }
   0xc   :  { %2067 = vmatpush3.bf16.msra.mxu0 %v2439_v21 }
   0xd   :  { %2072 = vmatprep.subr.bf16.mxu0 %v2364_v20 }
   0xe   :  { %2061 = vmatmul.mubr.msk.bf16.gmra.mrb[4].mxu0 %vm54_vm1, %v53_v13 }
   0xf   :  { %2068 = vmatprep.mubr.msk.bf16.mxu0 %vm2365_vm2, %v2364_v20 }
  0x16   :  { %2069 = vmatmul.mubr.bf16.vlgmr.msra.gmra.mrb[8].mxu0 %v2363_v18 }
  0x17   :  { %2073 = vmatpush3.bf16.msra.mxu0 %v2430_v19  ;;  %2076 = vmatprep.mubr.msk.bf16.mxu0 %vm2365_vm2, %v2364_v20 }
  0x18   :  { %2074 = vmatprep.subr.bf16.mxu0 %v2364_v20 }
  0x1b   :  { %2075 = vmatpush3.bf16.msra.mxu0 %v2439_v21 }
  0x1c   :  { %2080 = vmatprep.subr.bf16.mxu0 %v2364_v20 }
  0xd9   :  { %v2058_v22 = vpop.f32.mrb[0].mxu0 }
  0xda   :  { %v105_v23 = vpop.f32.mrb[1].mxu0 }
  0xdb   :  { %v2059_v24 = vpop.f32.mrb[2].mxu0 }
  0xdc   :  { %v137_v25 = vpack.c.bf16 %v2059_v24, %v2058_v22  ;;  %v108_v26 = vpop.f32.mrb[3].mxu0 }
  0xdd   :  { %v136_v27 = vpack.c.bf16 %v108_v26, %v105_v23 }
  0xdf   :  { %1929 = vmatmul.mubr.msk.bf16.vlgmr.msra.gmra.mrb[0].mxu1 %vm54_vm1, %v136_v27 }
  0xe0   :  { %205 = vmatprep.mubr.bf16.mxu1 %v2363_v18  ;;  %2089 = vmatpush3.bf16.msra.mxu1 %v2430_v19 }
  0xe1   :  { %v2062_v28 = vpop.f32.mrb[4].mxu0  ;;  %2090 = vmatprep.subr.bf16.mxu1 %v2364_v20 }
  0xe2   :  { %v121_v29 = vpop.f32.mrb[5].mxu0 }
  0xe3   :  { %v2063_v30 = vpop.f32.mrb[6].mxu0 }
  0xe4   :  { %v139_v31 = vpack.c.bf16 %v2063_v30, %v2062_v28  ;;  %v124_v32 = vpop.f32.mrb[7].mxu0  ;;  %2091 = vmatpush3.bf16.msra.mxu1 %v2439_v21 }
  0xe5   :  { %v138_v33 = vpack.c.bf16 %v124_v32, %v121_v29  ;;  %2104 = vmatprep.subr.bf16.mxu1 %v2364_v20 }
  0xe7   :  { %1930 = vmatmul.mubr.msk.bf16.gmra.mrb[4].mxu1 %vm54_vm1, %v137_v25 }
  0xe8   :  { %215 = vmatprep.mubr.bf16.mxu1 %v2363_v18 }
  0xe9   :  { %v306_v34 = vpop.f32.mrb[8].mxu0 }
  0xea   :  { %v2070_v35 = vpop.f32.mrb[9].mxu0 }
  0xeb   :  { %v309_v36 = vpop.f32.mrb[10].mxu0 }
  0xec   :  { %v2071_v37 = vpop.f32.mrb[11].mxu0 }
  0xef   :  { %1931 = vmatmul.mubr.msk.bf16.gmra.mrb[8].mxu1 %vm54_vm1, %v138_v33 }
  0xf0   :  { %225 = vmatprep.mubr.bf16.mxu1 %v2363_v18 }
  0xf7   :  { %1932 = vmatmul.mubr.msk.bf16.gmra.mrb[12].mxu1 %vm54_vm1, %v139_v31 }
  0xf8   :  { %2092 = vmatprep.mubr.msk.bf16.mxu1 %vm2365_vm2, %v2364_v20 }
 0x1b2   :  { %v197_v39 = vpop.f32.mrb[0].mxu1 }
 0x1b3   :  { %v240_v40 = vadd.f32 %v1933_v38, %v197_v39  ;;  %v199_v41 = vpop.f32.mrb[1].mxu1 }
 0x1b4   :  { %v201_v42 = vpop.f32.mrb[2].mxu1 }
 0x1b5   :  { %v241_v43 = vadd.f32 %v1933_v38, %v201_v42  ;;  %v203_v44 = vpop.f32.mrb[3].mxu1 }
 0x1ba   :  { %v207_v45 = vpop.f32.mrb[4].mxu1 }
 0x1bb   :  { %v242_v46 = vadd.f32 %v1933_v38, %v207_v45  ;;  %v209_v47 = vpop.f32.mrb[5].mxu1 }
 0x1bc   :  { %v211_v48 = vpop.f32.mrb[6].mxu1 }
 0x1bd   :  { %v243_v49 = vadd.f32 %v1933_v38, %v211_v48  ;;  %v213_v50 = vpop.f32.mrb[7].mxu1 }
 0x1c2   :  { %v217_v51 = vpop.f32.mrb[8].mxu1 }
 0x1c3   :  { %v244_v52 = vadd.f32 %v1933_v38, %v217_v51  ;;  %v219_v53 = vpop.f32.mrb[9].mxu1 }
 0x1c4   :  { %v2468_v54 = vadd.f32 %v243_v49, %v219_v53  ;;  %v221_v55 = vpop.f32.mrb[10].mxu1 }
 0x1c5   :  { %v245_v56 = vadd.f32 %v1933_v38, %v221_v55  ;;  %v223_v57 = vpop.f32.mrb[11].mxu1  ;;  %v2470_v58 = vadd.f32 %v244_v52, %v213_v50 }
 0x1c6   :  { %v2472_v59 = vadd.f32 %v242_v46, %v223_v57 }
 0x1c7   :  { %v2474_v60 = vadd.f32 %v245_v56, %v209_v47 }
 0x1ca   :  { %v227_v61 = vpop.f32.mrb[12].mxu1 }
 0x1cb   :  { %v246_v62 = vadd.f32 %v1933_v38, %v227_v61  ;;  %v229_v63 = vpop.f32.mrb[13].mxu1 }
 0x1cc   :  { %v2476_v0 = vadd.f32 %v241_v43, %v229_v63  ;;  %v231_v1 = vpop.f32.mrb[14].mxu1 }
 0x1cd   :  { %v247_v2 = vadd.f32 %v1933_v38, %v231_v1  ;;  %v233_v3 = vpop.f32.mrb[15].mxu1  ;;  %v249_v4 = vadd.f32 %v246_v62, %v203_v44 }
 0x1ce   :  { %v2478_v5 = vadd.f32 %v240_v40, %v233_v3 }
 0x1cf   :  { %v248_v6 = vadd.f32 %v247_v2, %v199_v41 }
 0x1d1   :  { %v312_v7 = vadd.f32 %v306_v34, %v248_v6 }
 0x1d3   :  { %2235 = vtanh.f32 %v312_v7  ;;  %v1936_v9 = vmul.f32 -1.442695, %v312_v7 }
 0x1d5   :  { %2237 = vpow2.f32 %v1936_v9 }
 0x1dd   :  { %v2236_v8 = vpop.eup %2235 }
 0x1de   :  { %322 = vrot.lane.b32.xlu0 %v2236_v8, %s2366_s10 }
 0x1df   :  { %v2238_v10 = vpop.eup %2237 }
 0x1e0   :  { %v316_v11 = vadd.f32 1.0, %v2238_v10 }
 0x1e2   :  { %2239 = vrcp.f32 %v316_v11 }
 0x1ec   :  { %v2240_v12 = vpop.eup %2239 }
 0x1ed   :  { %v320_v15 = vmul.f32 0.0, %v2240_v12 }
 0x250   :  { %v323_v13 = vpop.permute.xlu0 %322 }
 0x251   :  { %v325_v14 = vmul.f32 %v2240_v12, %v323_v13 }
 0x253   :  { %327 = vrot.lane.b32.xlu0 %v325_v14, %s2367_s11 }
 0x2c5   :  { %v328_v16 = vpop.permute.xlu0 %327 }
 0x2c6   :  { %v330_v17 = vadd.f32 %v328_v16, %v320_v15 }
 0x2c8   :  { %2241 = vtanh.f32 %v330_v17 }
 0x2d2   :  { %v2242_v22 = vpop.eup %2241 }
 0x2d3   :  { %333 = vrot.lane.b32.xlu1 %v2242_v22, %s2366_s10 }
 0x345   :  { %v334_v23 = vpop.permute.xlu1 %333 }
 0x346   :  { %v2483_v24 = vmul.f32 %v2240_v12, %v334_v23 }
 0x348   :  { %v337_v25 = vpack.c.bf16 %v2483_v24, %v2483_v24 }
 0x34a   :  { %339 = vrot.lane.b32.xlu1 %v337_v25, %s2367_s11 }
 0x3bc   :  { %v340_v26 = vpop.permute.xlu1 %339 }
 0x3bd   :  { %2077 = vmatmul.mubr.msk.bf16.vlgmr.msra.gmra.mrb[12].mxu0 %vm268_vm3, %v340_v26 }
 0x3be   :  { %2081 = vmatpush3.bf16.msra.mxu0 %v2430_v19  ;;  %2084 = vmatprep.mubr.msk.bf16.mxu0 %vm2365_vm2, %v2364_v20 }
 0x3bf   :  { %2082 = vmatprep.subr.bf16.mxu0 %v2364_v20 }
 0x3c2   :  { %2083 = vmatpush3.bf16.msra.mxu0 %v2439_v21 }
 0x3c3   :  { %2096 = vmatprep.subr.bf16.mxu0 %v2364_v20 }
 0x490   :  { %v378_v27 = vpop.f32.mrb[12].mxu0 }
 0x491   :  { %v384_v28 = vadd.f32 %v378_v27, %v249_v4  ;;  %v2078_v29 = vpop.f32.mrb[13].mxu0 }
 0x492   :  { %v381_v30 = vpop.f32.mrb[14].mxu0 }
 0x493   :  { %2243 = vtanh.f32 %v384_v28  ;;  %v2079_v31 = vpop.f32.mrb[15].mxu0  ;;  %v1938_v33 = vmul.f32 -1.442695, %v384_v28 }
 0x495   :  { %2245 = vpow2.f32 %v1938_v33 }
 0x49d   :  { %v2244_v32 = vpop.eup %2243 }
 0x49e   :  { %394 = vrot.lane.b32.xlu0 %v2244_v32, %s2366_s10 }
 0x49f   :  { %v2246_v34 = vpop.eup %2245 }
 0x4a0   :  { %v388_v35 = vadd.f32 1.0, %v2246_v34 }
 0x4a2   :  { %2247 = vrcp.f32 %v388_v35 }
 0x4ac   :  { %v2248_v36 = vpop.eup %2247 }
 0x4ad   :  { %v392_v39 = vmul.f32 %v2248_v36, %v330_v17 }
 0x510   :  { %v395_v37 = vpop.permute.xlu0 %394 }
 0x511   :  { %v397_v38 = vmul.f32 %v2248_v36, %v395_v37 }
 0x513   :  { %399 = vrot.lane.b32.xlu1 %v397_v38, %s2367_s11 }
 0x585   :  { %v400_v40 = vpop.permute.xlu1 %399 }
 0x586   :  { %v402_v41 = vadd.f32 %v400_v40, %v392_v39 }
 0x588   :  { %2249 = vtanh.f32 %v402_v41 }
 0x592   :  { %v2250_v42 = vpop.eup %2249 }
 0x593   :  { %405 = vrot.lane.b32.xlu0 %v2250_v42, %s2366_s10 }
 0x605   :  { %v406_v43 = vpop.permute.xlu0 %405 }
 0x606   :  { %v2498_v44 = vmul.f32 %v2248_v36, %v406_v43 }
 0x608   :  { %v409_v45 = vpack.c.bf16 %v2498_v44, %v2498_v44 }
 0x60a   :  { %411 = vrot.lane.b32.xlu1 %v409_v45, %s2367_s11 }
 0x67c   :  { %v412_v46 = vpop.permute.xlu1 %411 }
 0x67d   :  { %2085 = vmatmul.mubr.msk.bf16.vlgmr.msra.gmra.mrb[16].mxu0 %vm268_vm3, %v412_v46 }
 0x67e   :  { %2097 = vmatpush3.bf16.msra.mxu0 %v2430_v19  ;;  %2100 = vmatprep.mubr.msk.bf16.mxu0 %vm2365_vm2, %v2364_v20 }
 0x67f   :  { %2098 = vmatprep.subr.bf16.mxu0 %v2364_v20 }
 0x682   :  { %2099 = vmatpush3.bf16.msra.mxu0 %v2439_v21 }
 0x683   :  { %2112 = vmatprep.subr.bf16.mxu0 %v2364_v20 }
 0x750   :  { %v450_v47 = vpop.f32.mrb[16].mxu0 }
 0x751   :  { %v456_v48 = vadd.f32 %v450_v47, %v2474_v60  ;;  %v2086_v49 = vpop.f32.mrb[17].mxu0 }
 0x752   :  { %v453_v50 = vpop.f32.mrb[18].mxu0 }
 0x753   :  { %2251 = vtanh.f32 %v456_v48  ;;  %v2087_v51 = vpop.f32.mrb[19].mxu0  ;;  %v1940_v53 = vmul.f32 -1.442695, %v456_v48 }
 0x755   :  { %2253 = vpow2.f32 %v1940_v53 }
 0x75d   :  { %v2252_v52 = vpop.eup %2251 }
 0x75e   :  { %466 = vrot.lane.b32.xlu0 %v2252_v52, %s2366_s10 }
 0x75f   :  { %v2254_v55 = vpop.eup %2253 }
 0x760   :  { %v460_v56 = vadd.f32 1.0, %v2254_v55 }
 0x762   :  { %2255 = vrcp.f32 %v460_v56 }
 0x76c   :  { %v2256_v57 = vpop.eup %2255 }
 0x76d   :  { %v464_v63 = vmul.f32 %v2256_v57, %v402_v41 }
 0x7d0   :  { %v467_v61 = vpop.permute.xlu0 %466 }
 0x7d1   :  { %v469_v62 = vmul.f32 %v2256_v57, %v467_v61 }
 0x7d3   :  { %471 = vrot.lane.b32.xlu1 %v469_v62, %s2367_s11 }
 0x845   :  { %v472_v1 = vpop.permute.xlu1 %471 }
 0x846   :  { %v474_v60 = vadd.f32 %v472_v1, %v464_v63 }
 0x848   :  { %2257 = vtanh.f32 %v474_v60 }
 0x852   :  { %v2258_v2 = vpop.eup %2257 }
 0x853   :  { %477 = vrot.lane.b32.xlu0 %v2258_v2, %s2366_s10 }
 0x8c5   :  { %v478_v3 = vpop.permute.xlu0 %477 }
 0x8c6   :  { %v2514_v4 = vmul.f32 %v2256_v57, %v478_v3 }
 0x8c8   :  { %v481_v6 = vpack.c.bf16 %v2514_v4, %v2514_v4 }
 0x8ca   :  { %483 = vrot.lane.b32.xlu1 %v481_v6, %s2367_s11 }
 0x93c   :  { %v484_v7 = vpop.permute.xlu1 %483 }
 0x93d   :  { %2093 = vmatmul.mubr.msk.bf16.vlgmr.msra.gmra.mrb[16].mxu1 %vm268_vm3, %v484_v7 }
 0x93e   :  { %2105 = vmatpush3.bf16.msra.mxu1 %v2430_v19  ;;  %2108 = vmatprep.mubr.msk.bf16.mxu1 %vm2365_vm2, %v2364_v20 }
 0x93f   :  { %2106 = vmatprep.subr.bf16.mxu1 %v2364_v20 }
 0x942   :  { %2107 = vmatpush3.bf16.msra.mxu1 %v2439_v21 }
 0x943   :  { %2120 = vmatprep.subr.bf16.mxu1 %v2364_v20 }
 0xa10   :  { %v522_v8 = vpop.f32.mrb[16].mxu1 }
 0xa11   :  { %v528_v9 = vadd.f32 %v522_v8, %v2470_v58  ;;  %v2094_v10 = vpop.f32.mrb[17].mxu1 }
 0xa12   :  { %v525_v11 = vpop.f32.mrb[18].mxu1 }
 0xa13   :  { %2259 = vtanh.f32 %v528_v9  ;;  %v2095_v12 = vpop.f32.mrb[19].mxu1  ;;  %v1942_v14 = vmul.f32 -1.442695, %v528_v9 }
 0xa15   :  { %2261 = vpow2.f32 %v1942_v14 }
 0xa1d   :  { %v2260_v13 = vpop.eup %2259 }
 0xa1e   :  { %538 = vrot.lane.b32.xlu0 %v2260_v13, %s2366_s10 }
 0xa1f   :  { %v2262_v15 = vpop.eup %2261 }
 0xa20   :  { %v532_v16 = vadd.f32 1.0, %v2262_v15 }
 0xa22   :  { %2263 = vrcp.f32 %v532_v16 }
 0xa2c   :  { %v2264_v17 = vpop.eup %2263 }
 0xa2d   :  { %v536_v25 = vmul.f32 %v2264_v17, %v474_v60 }
 0xa90   :  { %v539_v22 = vpop.permute.xlu0 %538 }
 0xa91   :  { %v541_v23 = vmul.f32 %v2264_v17, %v539_v22 }
 0xa93   :  { %543 = vrot.lane.b32.xlu1 %v541_v23, %s2367_s11 }
 0xb05   :  { %v544_v26 = vpop.permute.xlu1 %543 }
 0xb06   :  { %v546_v58 = vadd.f32 %v544_v26, %v536_v25 }
 0xb08   :  { %2265 = vtanh.f32 %v546_v58 }
 0xb12   :  { %v2266_v27 = vpop.eup %2265 }
 0xb13   :  { %549 = vrot.lane.b32.xlu0 %v2266_v27, %s2366_s10 }
 0xb85   :  { %v550_v28 = vpop.permute.xlu0 %549 }
 0xb86   :  { %v2530_v29 = vmul.f32 %v2264_v17, %v550_v28 }
 0xb88   :  { %v553_v30 = vpack.c.bf16 %v2530_v29, %v2530_v29 }
 0xb8a   :  { %555 = vrot.lane.b32.xlu1 %v553_v30, %s2367_s11 }
 0xbfc   :  { %v556_v31 = vpop.permute.xlu1 %555 }
 0xbfd   :  { %2101 = vmatmul.mubr.msk.bf16.vlgmr.msra.gmra.mrb[20].mxu0 %vm268_vm3, %v556_v31 }
 0xbfe   :  { %2113 = vmatpush3.bf16.msra.mxu0 %v2430_v19  ;;  %2116 = vmatprep.mubr.msk.bf16.mxu0 %vm2365_vm2, %v2364_v20 }
 0xbff   :  { %2114 = vmatprep.subr.bf16.mxu0 %v2364_v20 }
 0xc02   :  { %2115 = vmatpush3.bf16.msra.mxu0 %v2439_v21 }
 0xcd0   :  { %v594_v32 = vpop.f32.mrb[20].mxu0 }
 0xcd1   :  { %v600_v33 = vadd.f32 %v594_v32, %v2468_v54  ;;  %v2102_v34 = vpop.f32.mrb[21].mxu0 }
 0xcd2   :  { %v597_v35 = vpop.f32.mrb[22].mxu0 }
 0xcd3   :  { %2267 = vtanh.f32 %v600_v33  ;;  %v2103_v36 = vpop.f32.mrb[23].mxu0  ;;  %v1944_v38 = vmul.f32 -1.442695, %v600_v33 }
 0xcd5   :  { %2269 = vpow2.f32 %v1944_v38 }
 0xcdd   :  { %v2268_v37 = vpop.eup %2267 }
 0xcde   :  { %610 = vrot.lane.b32.xlu0 %v2268_v37, %s2366_s10 }
 0xcdf   :  { %v2270_v39 = vpop.eup %2269 }
 0xce0   :  { %v604_v40 = vadd.f32 1.0, %v2270_v39 }
 0xce2   :  { %2271 = vrcp.f32 %v604_v40 }
 0xcec   :  { %v2272_v41 = vpop.eup %2271 }
 0xced   :  { %v608_v45 = vmul.f32 %v2272_v41, %v546_v58 }
 0xd50   :  { %v611_v42 = vpop.permute.xlu0 %610 }
 0xd51   :  { %v613_v43 = vmul.f32 %v2272_v41, %v611_v42 }
 0xd53   :  { %615 = vrot.lane.b32.xlu1 %v613_v43, %s2367_s11 }
 0xdc5   :  { %v616_v46 = vpop.permute.xlu1 %615 }
 0xdc6   :  { %v618_v54 = vadd.f32 %v616_v46, %v608_v45 }
 0xdc8   :  { %2273 = vtanh.f32 %v618_v54 }
 0xdd2   :  { %v2274_v47 = vpop.eup %2273 }
 0xdd3   :  { %621 = vrot.lane.b32.xlu0 %v2274_v47, %s2366_s10 }
 0xe45   :  { %v622_v48 = vpop.permute.xlu0 %621 }
 0xe46   :  { %v2545_v49 = vmul.f32 %v2272_v41, %v622_v48 }
 0xe48   :  { %v625_v50 = vpack.c.bf16 %v2545_v49, %v2545_v49 }
 0xe4a   :  { %627 = vrot.lane.b32.xlu1 %v625_v50, %s2367_s11  ;;  %v2224_v50 = vld [vmem:[%s2946_s1 + $0x8] ss:$8 sps:$4 sm:$0xff]  }
 0xebc   :  { %v628_v51 = vpop.permute.xlu1 %627 }
 0xebd   :  { %2109 = vmatmul.mubr.msk.bf16.vlgmr.msra.gmra.mrb[20].mxu1 %vm268_vm3, %v628_v51 }
 0xebe   :  { %2121 = vmatpush3.bf16.msra.mxu1 %v2430_v19  ;;  %2124 = vmatprep.mubr.msk.bf16.mxu1 %vm2365_vm2, %v2364_v20 }
 0xebf   :  { %2122 = vmatprep.subr.bf16.mxu1 %v2364_v20 }
 0xec2   :  { %2123 = vmatpush3.bf16.msra.mxu1 %v2439_v21 }
 0xec3   :  { %2128 = vmatprep.subr.bf16.mxu1 %v2364_v20 }
 0xf90   :  { %v666_v52 = vpop.f32.mrb[20].mxu1 }
 0xf91   :  { %v672_v53 = vadd.f32 %v666_v52, %v2472_v59  ;;  %v2110_v55 = vpop.f32.mrb[21].mxu1 }
 0xf92   :  { %v669_v56 = vpop.f32.mrb[22].mxu1  ;;  %v2622_v55 = vld [vmem:[%s2946_s1 + $0x3c] ss:$8 sps:$4 sm:$0xff]  }
 0xf93   :  { %2275 = vtanh.f32 %v672_v53  ;;  %v2111_v57 = vpop.f32.mrb[23].mxu1  ;;  %v1946_v19 = vmul.f32 -1.442695, %v672_v53  ;;  %v2614_v53 = vld [vmem:[%s2946_s1 + $0x2c] ss:$8 sps:$4 sm:$0xff]   ;;  %v39_v56 = vlaneseq }
 0xf95   :  { %2277 = vpow2.f32 %v1946_v19  ;;  %v2634_v57 = vand.u32 127, %v39_v56 }
 0xf97   :  { %vm41_vm4 = vcmp.lt.s32.totalorder %v2634_v57, 16 }
 0xf9d   :  { %v2276_v61 = vpop.eup %2275 }
 0xf9e   :  { %682 = vrot.lane.b32.xlu0 %v2276_v61, %s2366_s10 }
 0xf9f   :  { %v2278_v62 = vpop.eup %2277 }
 0xfa0   :  { %v676_v63 = vadd.f32 1.0, %v2278_v62 }
 0xfa2   :  { %2279 = vrcp.f32 %v676_v63 }
 0xfac   :  { %v2280_v1 = vpop.eup %2279 }
 0xfad   :  { %v680_v2 = vmul.f32 %v2280_v1, %v618_v54 }
0x1010   :  { %v683_v60 = vpop.permute.xlu0 %682 }
0x1011   :  { %v685_v21 = vmul.f32 %v2280_v1, %v683_v60 }
0x1013   :  { %687 = vrot.lane.b32.xlu1 %v685_v21, %s2367_s11 }
0x1085   :  { %v688_v3 = vpop.permute.xlu1 %687 }
0x1086   :  { %v690_v59 = vadd.f32 %v688_v3, %v680_v2 }
0x1088   :  { %2281 = vtanh.f32 %v690_v59 }
0x1092   :  { %v2282_v6 = vpop.eup %2281 }
0x1093   :  { %693 = vrot.lane.b32.xlu0 %v2282_v6, %s2366_s10 }
0x1105   :  { %v694_v7 = vpop.permute.xlu0 %693 }
0x1106   :  { %v2561_v8 = vmul.f32 %v2280_v1, %v694_v7 }
0x1108   :  { %v697_v9 = vpack.c.bf16 %v2561_v8, %v2561_v8 }
0x110a   :  { %699 = vrot.lane.b32.xlu1 %v697_v9, %s2367_s11 }
0x117c   :  { %v700_v10 = vpop.permute.xlu1 %699 }
0x117d   :  { %2117 = vmatmul.mubr.msk.bf16.vlgmr.msra.gmra.mrb[24].mxu0 %vm268_vm3, %v700_v10 }
0x117e   :  { %949 = vmatprep.mubr.bf16.mxu0 %v2363_v18 }
0x1250   :  { %v738_v11 = vpop.f32.mrb[24].mxu0 }
0x1251   :  { %v744_v12 = vadd.f32 %v738_v11, %v2476_v0  ;;  %v2118_v13 = vpop.f32.mrb[25].mxu0 }
0x1252   :  { %v741_v14 = vpop.f32.mrb[26].mxu0 }
0x1253   :  { %2283 = vtanh.f32 %v744_v12  ;;  %v2119_v15 = vpop.f32.mrb[27].mxu0  ;;  %v1948_v17 = vmul.f32 -1.442695, %v744_v12 }
0x1255   :  { %2285 = vpow2.f32 %v1948_v17 }
0x125d   :  { %v2284_v16 = vpop.eup %2283 }
0x125e   :  { %754 = vrot.lane.b32.xlu0 %v2284_v16, %s2366_s10 }
0x125f   :  { %v2286_v22 = vpop.eup %2285 }
0x1260   :  { %v748_v23 = vadd.f32 1.0, %v2286_v22 }
0x1262   :  { %2287 = vrcp.f32 %v748_v23 }
0x126c   :  { %v2288_v25 = vpop.eup %2287 }
0x126d   :  { %v752_v27 = vmul.f32 %v2288_v25, %v690_v59 }
0x12d0   :  { %v755_v26 = vpop.permute.xlu0 %754 }
0x12d1   :  { %v757_v58 = vmul.f32 %v2288_v25, %v755_v26 }
0x12d3   :  { %759 = vrot.lane.b32.xlu1 %v757_v58, %s2367_s11 }
0x1345   :  { %v760_v28 = vpop.permute.xlu1 %759 }
0x1346   :  { %v762_v0 = vadd.f32 %v760_v28, %v752_v27 }
0x1348   :  { %2289 = vtanh.f32 %v762_v0 }
0x1352   :  { %v2290_v30 = vpop.eup %2289 }
0x1353   :  { %765 = vrot.lane.b32.xlu0 %v2290_v30, %s2366_s10 }
0x13c5   :  { %v766_v31 = vpop.permute.xlu0 %765 }
0x13c6   :  { %v768_v32 = vmul.f32 %v2288_v25, %v766_v31  ;;  %v1959_v25 = vld [vmem:[%s2948_s2 + $0x1] ss:$0 sm:$0xff] }
0x13c8   :  { %v769_v33 = vpack.c.bf16 %v768_v32, %v768_v32 }
0x13ca   :  { %771 = vrot.lane.b32.xlu1 %v769_v33, %s2367_s11 }
0x143c   :  { %v772_v34 = vpop.permute.xlu1 %771 }
0x143d   :  { %2125 = vmatmul.mubr.msk.bf16.vlgmr.msra.gmra.mrb[24].mxu1 %vm268_vm3, %v772_v34 }
0x143e   :  { %2132 = vmatprep.mubr.msk.bf16.mxu1 %vm2365_vm2, %v2364_v20  ;;  %2129 = vmatpush3.bf16.msra.mxu1 %v2614_v53 }
0x143f   :  { %2130 = vmatprep.subr.bf16.mxu1 %v2364_v20 }
0x1442   :  { %2131 = vmatpush3.bf16.msra.mxu1 %v2622_v55 }
0x1443   :  { %2136 = vmatprep.subr.bf16.mxu1 %v2364_v20 }
0x1445   :  { %2133 = vmatmul.mubr.bf16.vlgmr.msra.gmra.mrb[28].mxu1 %v2363_v18 }
0x1446   :  { %2137 = vmatpush3.bf16.msra.mxu1 %v2614_v53  ;;  %2140 = vmatprep.mubr.msk.bf16.mxu1 %vm2365_vm2, %v2364_v20 }
0x1447   :  { %2138 = vmatprep.subr.bf16.mxu1 %v2364_v20 }
0x144a   :  { %2139 = vmatpush3.bf16.msra.mxu1 %v2622_v55 }
0x144b   :  { %2144 = vmatprep.subr.bf16.mxu1 %v2364_v20 }
0x1510   :  { %v810_v35 = vpop.f32.mrb[24].mxu1 }
0x1511   :  { %v816_v36 = vadd.f32 %v810_v35, %v2478_v5  ;;  %v2126_v37 = vpop.f32.mrb[25].mxu1 }
0x1512   :  { %v813_v38 = vpop.f32.mrb[26].mxu1 }
0x1513   :  { %2291 = vtanh.f32 %v816_v36  ;;  %v2127_v39 = vpop.f32.mrb[27].mxu1  ;;  %v1950_v41 = vmul.f32 -1.442695, %v816_v36 }
0x1515   :  { %2293 = vpow2.f32 %v1950_v41 }
0x1518   :  { %v1056_v15 = vpop.f32.mrb[28].mxu1 }
0x151d   :  { %v2292_v40 = vpop.eup %2291 }
0x151e   :  { %826 = vrot.lane.b32.xlu0 %v2292_v40, %s2366_s10 }
0x151f   :  { %v2294_v42 = vpop.eup %2293 }
0x1520   :  { %v820_v43 = vadd.f32 1.0, %v2294_v42 }
0x1522   :  { %2295 = vrcp.f32 %v820_v43 }
0x152c   :  { %v2296_v45 = vpop.eup %2295 }
0x152d   :  { %v824_v5 = vmul.f32 %v2296_v45, %v762_v0 }
0x1590   :  { %v827_v46 = vpop.permute.xlu0 %826 }
0x1591   :  { %v829_v54 = vmul.f32 %v2296_v45, %v827_v46 }
0x1593   :  { %831 = vrot.lane.b32.xlu1 %v829_v54, %s2367_s11 }
0x1597   :  { %842 = vrot.lane.b32.xlu1 %v2483_v24, %s2367_s11  ;;  %v2226_v24 = vld [vmem:[%s2946_s1 + $0xc] ss:$8 sps:$4 sm:$0xff]  }
0x1598   :  { %917 = vmatprep.subr.bf16.mxu0 %v2226_v24 }
0x1599   :  { %918 = vmatpush1.bf16.msra.mxu0 %v2224_v50 }
0x159b   :  { %851 = vrot.lane.b32.xlu1 %v2498_v44, %s2367_s11  ;;  %v2229_v44 = vld [vmem:[%s2946_s1 + $0x1c] ss:$8 sps:$4 sm:$0xff]  }
0x159c   :  { %919 = vmatprep.subr.bf16.mxu0 %v2229_v44 }
0x159f   :  { %860 = vrot.lane.b32.xlu1 %v2514_v4, %s2367_s11 }
0x15a3   :  { %869 = vrot.lane.b32.xlu1 %v2530_v29, %s2367_s11  ;;  %v2227_v29 = vld [vmem:[%s2946_s1 + $0x18] ss:$8 sps:$4 sm:$0xff]  }
0x15a4   :  { %920 = vmatpush1.bf16.msra.mxu0 %v2227_v29 }
0x15a5   :  { %2160 = vmatprep.subr.bf16.mxu0 %v2364_v20 }
0x1605   :  { %v832_v47 = vpop.permute.xlu1 %831 }
0x1606   :  { %v2587_v48 = vadd.f32 %v832_v47, %v824_v5 }
0x1608   :  { %2297 = vtanh.f32 %v2587_v48 }
0x1612   :  { %v2298_v4 = vpop.eup %2297 }
0x1613   :  { %837 = vrot.lane.b32.xlu0 %v2298_v4, %s2366_s10 }
0x1617   :  { %855 = vrot.lane.b32.xlu0 %v768_v32, %s2367_s11 }
0x1685   :  { %v838_v51 = vpop.permute.xlu0 %837 }
0x1686   :  { %v2605_v52 = vmul.f32 %v2296_v45, %v838_v51 }
0x1688   :  { %846 = vrot.lane.b32.xlu0 %v2605_v52, %s2367_s11 }
0x1689   :  { %v856_v19 = vpop.permute.xlu0 %855 }
0x168c   :  { %864 = vrot.lane.b32.xlu0 %v2561_v8, %s2367_s11 }
0x1690   :  { %873 = vrot.lane.b32.xlu0 %v2545_v49, %s2367_s11  ;;  %v843_v49 = vpop.permute.xlu1 %842 }
0x1694   :  { %v852_v61 = vpop.permute.xlu1 %851 }
0x1695   :  { %v2639_v63 = vsel %vm41_vm4, %v852_v61, %v856_v19  ;;  %v2692_v13 = vsel %vm41_vm4, %v856_v19, %v852_v61 }
0x1698   :  { %v861_v60 = vpop.permute.xlu1 %860 }
0x169c   :  { %v870_v3 = vpop.permute.xlu1 %869 }
0x16fa   :  { %v847_v62 = vpop.permute.xlu0 %846 }
0x16fb   :  { %v2643_v1 = vsel %vm41_vm4, %v843_v49, %v847_v62  ;;  %v2688_v12 = vsel %vm41_vm4, %v847_v62, %v843_v49 }
0x16fc   :  { %v2647_v21 = vpack.c.bf16 %v2639_v63, %v2643_v1  ;;  %v2696_v14 = vpack.c.bf16 %v2688_v12, %v2692_v13 }
0x16fe   :  { %1955 = vmatmul.mubr.msk.bf16.vlgmr.msra.gmra.mrb[28].mxu0 %vm268_vm3, %v2647_v21  ;;  %v865_v2 = vpop.permute.xlu0 %864 }
0x16ff   :  { %959 = vmatprep.mubr.bf16.mxu0 %v2363_v18  ;;  %2161 = vmatpush3.bf16.msra.mxu0 %v2614_v53  ;;  %v2656_v6 = vsel %vm41_vm4, %v861_v60, %v865_v2  ;;  %v2677_v10 = vsel %vm41_vm4, %v865_v2, %v861_v60 }
0x1700   :  { %2162 = vmatprep.subr.bf16.mxu0 %v2364_v20 }
0x1702   :  { %v874_v59 = vpop.permute.xlu0 %873 }
0x1703   :  { %v2660_v7 = vsel %vm41_vm4, %v870_v3, %v874_v59  ;;  %2163 = vmatpush3.bf16.msra.mxu0 %v2622_v55  ;;  %v2673_v9 = vsel %vm41_vm4, %v874_v59, %v870_v3 }
0x1704   :  { %v2665_v8 = vpack.c.bf16 %v2660_v7, %v2656_v6  ;;  %2176 = vmatprep.subr.bf16.mxu0 %v2364_v20  ;;  %v2681_v11 = vpack.c.bf16 %v2677_v10, %v2673_v9 }
0x1706   :  { %1956 = vmatmul.mubr.msk.bf16.gmra.mrb[32].mxu0 %vm268_vm3, %v2665_v8 }
0x1707   :  { %969 = vmatprep.mubr.bf16.mxu0 %v2363_v18 }
0x170e   :  { %1957 = vmatmul.mubr.msk.bf16.gmra.mrb[36].mxu0 %vm268_vm3, %v2681_v11 }
0x170f   :  { %979 = vmatprep.mubr.bf16.mxu0 %v2363_v18  ;;  %v2134_v18 = vpop.f32.mrb[29].mxu1 }
0x1710   :  { %v1059_v16 = vpop.f32.mrb[30].mxu1 }
0x1711   :  { %v2135_v17 = vpop.f32.mrb[31].mxu1 }
0x1716   :  { %1958 = vmatmul.mubr.msk.bf16.gmra.mrb[40].mxu0 %vm268_vm3, %v2696_v14 }
0x1717   :  { %2164 = vmatprep.mubr.msk.bf16.mxu0 %vm2365_vm2, %v2364_v20 }
0x17d1   :  { %v951_v22 = vpop.f32.mrb[28].mxu0 }
0x17d2   :  { %v953_v23 = vpop.f32.mrb[29].mxu0  ;;  %v994_v5 = vadd.f32 %v1959_v25, %v951_v22 }
0x17d3   :  { %v955_v26 = vpop.f32.mrb[30].mxu0 }
0x17d4   :  { %v995_v58 = vadd.f32 %v1959_v25, %v955_v26  ;;  %v957_v27 = vpop.f32.mrb[31].mxu0 }
0x17d9   :  { %v961_v28 = vpop.f32.mrb[32].mxu0 }
0x17da   :  { %v996_v0 = vadd.f32 %v1959_v25, %v961_v28  ;;  %v963_v30 = vpop.f32.mrb[33].mxu0 }
0x17db   :  { %v965_v31 = vpop.f32.mrb[34].mxu0 }
0x17dc   :  { %v997_v32 = vadd.f32 %v1959_v25, %v965_v31  ;;  %v967_v33 = vpop.f32.mrb[35].mxu0 }
0x17e1   :  { %v971_v34 = vpop.f32.mrb[36].mxu0 }
0x17e2   :  { %v998_v35 = vadd.f32 %v1959_v25, %v971_v34  ;;  %v973_v36 = vpop.f32.mrb[37].mxu0 }
0x17e3   :  { %v2705_v37 = vadd.f32 %v997_v32, %v973_v36  ;;  %v975_v38 = vpop.f32.mrb[38].mxu0 }
0x17e4   :  { %v999_v39 = vadd.f32 %v1959_v25, %v975_v38  ;;  %v977_v40 = vpop.f32.mrb[39].mxu0  ;;  %v2707_v41 = vadd.f32 %v998_v35, %v967_v33 }
0x17e5   :  { %v2709_v42 = vadd.f32 %v996_v0, %v977_v40 }
0x17e6   :  { %v2711_v43 = vadd.f32 %v999_v39, %v963_v30 }
0x17e9   :  { %v981_v45 = vpop.f32.mrb[40].mxu0 }
0x17ea   :  { %v1000_v46 = vadd.f32 %v1959_v25, %v981_v45  ;;  %v983_v54 = vpop.f32.mrb[41].mxu0 }
0x17eb   :  { %v1003_v47 = vadd.f32 %v995_v58, %v983_v54  ;;  %v985_v50 = vpop.f32.mrb[42].mxu0 }
0x17ec   :  { %v1001_v24 = vadd.f32 %v1959_v25, %v985_v50  ;;  %v987_v44 = vpop.f32.mrb[43].mxu0  ;;  %v2713_v4 = vadd.f32 %v1000_v46, %v957_v27 }
0x17ed   :  { %v1002_v29 = vadd.f32 %v994_v5, %v987_v44 }
0x17ee   :  { %v2715_v51 = vadd.f32 %v1001_v24, %v953_v23 }
0x17ef   :  { %v1062_v49 = vadd.f32 %v1056_v15, %v1002_v29 }
0x17f1   :  { %2299 = vtanh.f32 %v1062_v49  ;;  %v1962_v61 = vmul.f32 -1.442695, %v1062_v49 }
0x17f3   :  { %2301 = vpow2.f32 %v1962_v61 }
0x17fb   :  { %v2300_v56 = vpop.eup %2299 }
0x17fc   :  { %1072 = vrot.lane.b32.xlu1 %v2300_v56, %s2366_s10 }
0x17fd   :  { %v2302_v19 = vpop.eup %2301 }
0x17fe   :  { %v1066_v62 = vadd.f32 1.0, %v2302_v19 }
0x1800   :  { %2303 = vrcp.f32 %v1066_v62 }
0x180a   :  { %v2304_v60 = vpop.eup %2303 }
0x180b   :  { %v1070_v59 = vmul.f32 0.0, %v2304_v60 }
0x186e   :  { %v1073_v2 = vpop.permute.xlu1 %1072 }
0x186f   :  { %v1075_v3 = vmul.f32 %v2304_v60, %v1073_v2 }
0x1871   :  { %1077 = vrot.lane.b32.xlu0 %v1075_v3, %s2367_s11 }
0x18e3   :  { %v1078_v18 = vpop.permute.xlu0 %1077 }
0x18e4   :  { %v1080_v16 = vadd.f32 %v1078_v18, %v1070_v59 }
0x18e6   :  { %2305 = vtanh.f32 %v1080_v16 }
0x18f0   :  { %v2306_v17 = vpop.eup %2305 }
0x18f1   :  { %1083 = vrot.lane.b32.xlu1 %v2306_v17, %s2366_s10 }
0x1963   :  { %v1084_v15 = vpop.permute.xlu1 %1083 }
0x1964   :  { %v2720_v22 = vmul.f32 %v2304_v60, %v1084_v15 }
0x1966   :  { %v1087_v23 = vpack.c.bf16 %v2720_v22, %v2720_v22 }
0x1968   :  { %1089 = vrot.lane.b32.xlu0 %v1087_v23, %s2367_s11 }
0x19da   :  { %v1090_v25 = vpop.permute.xlu0 %1089 }
0x19db   :  { %2141 = vmatmul.mubr.msk.bf16.vlgmr.msra.gmra.mrb[32].mxu1 %vm268_vm3, %v1090_v25 }
0x19dc   :  { %2145 = vmatpush3.bf16.msra.mxu1 %v2614_v53  ;;  %2148 = vmatprep.mubr.msk.bf16.mxu1 %vm2365_vm2, %v2364_v20 }
0x19dd   :  { %2146 = vmatprep.subr.bf16.mxu1 %v2364_v20 }
0x19e0   :  { %2147 = vmatpush3.bf16.msra.mxu1 %v2622_v55 }
0x19e1   :  { %2152 = vmatprep.subr.bf16.mxu1 %v2364_v20 }
0x1aae   :  { %v1128_v26 = vpop.f32.mrb[32].mxu1 }
0x1aaf   :  { %v1134_v58 = vadd.f32 %v1128_v26, %v1003_v47  ;;  %v2142_v27 = vpop.f32.mrb[33].mxu1 }
0x1ab0   :  { %v1131_v28 = vpop.f32.mrb[34].mxu1 }
0x1ab1   :  { %2307 = vtanh.f32 %v1134_v58  ;;  %v2143_v0 = vpop.f32.mrb[35].mxu1  ;;  %v1964_v31 = vmul.f32 -1.442695, %v1134_v58 }
0x1ab3   :  { %2309 = vpow2.f32 %v1964_v31 }
0x1abb   :  { %v2308_v30 = vpop.eup %2307 }
0x1abc   :  { %1144 = vrot.lane.b32.xlu1 %v2308_v30, %s2366_s10 }
0x1abd   :  { %v2310_v32 = vpop.eup %2309 }
0x1abe   :  { %v1138_v33 = vadd.f32 1.0, %v2310_v32 }
0x1ac0   :  { %2311 = vrcp.f32 %v1138_v33 }
0x1aca   :  { %v2312_v34 = vpop.eup %2311 }
0x1acb   :  { %v1142_v38 = vmul.f32 %v2312_v34, %v1080_v16 }
0x1b2e   :  { %v1145_v35 = vpop.permute.xlu1 %1144 }
0x1b2f   :  { %v1147_v36 = vmul.f32 %v2312_v34, %v1145_v35 }
0x1b31   :  { %1149 = vrot.lane.b32.xlu0 %v1147_v36, %s2367_s11 }
0x1ba3   :  { %v1150_v39 = vpop.permute.xlu0 %1149 }
0x1ba4   :  { %v1152_v40 = vadd.f32 %v1150_v39, %v1142_v38 }
0x1ba6   :  { %2313 = vtanh.f32 %v1152_v40 }
0x1bb0   :  { %v2314_v45 = vpop.eup %2313 }
0x1bb1   :  { %1155 = vrot.lane.b32.xlu1 %v2314_v45, %s2366_s10 }
0x1c23   :  { %v1156_v46 = vpop.permute.xlu1 %1155 }
0x1c24   :  { %v2735_v54 = vmul.f32 %v2312_v34, %v1156_v46 }
0x1c26   :  { %v1159_v5 = vpack.c.bf16 %v2735_v54, %v2735_v54 }
0x1c28   :  { %1161 = vrot.lane.b32.xlu0 %v1159_v5, %s2367_s11 }
0x1c9a   :  { %v1162_v47 = vpop.permute.xlu0 %1161 }
0x1c9b   :  { %2149 = vmatmul.mubr.msk.bf16.vlgmr.msra.gmra.mrb[36].mxu1 %vm268_vm3, %v1162_v47 }
0x1c9c   :  { %2153 = vmatpush3.bf16.msra.mxu1 %v2614_v53  ;;  %2156 = vmatprep.mubr.msk.bf16.mxu1 %vm2365_vm2, %v2364_v20 }
0x1c9d   :  { %2154 = vmatprep.subr.bf16.mxu1 %v2364_v20 }
0x1ca0   :  { %2155 = vmatpush3.bf16.msra.mxu1 %v2622_v55 }
0x1ca1   :  { %2168 = vmatprep.subr.bf16.mxu1 %v2364_v20 }
0x1d6e   :  { %v1200_v50 = vpop.f32.mrb[36].mxu1 }
0x1d6f   :  { %v1206_v24 = vadd.f32 %v1200_v50, %v2709_v42  ;;  %v2150_v44 = vpop.f32.mrb[37].mxu1 }
0x1d70   :  { %v1203_v29 = vpop.f32.mrb[38].mxu1 }
0x1d71   :  { %2315 = vtanh.f32 %v1206_v24  ;;  %v2151_v49 = vpop.f32.mrb[39].mxu1  ;;  %v1966_v61 = vmul.f32 -1.442695, %v1206_v24 }
0x1d73   :  { %2317 = vpow2.f32 %v1966_v61 }
0x1d7b   :  { %v2316_v56 = vpop.eup %2315 }
0x1d7c   :  { %1216 = vrot.lane.b32.xlu1 %v2316_v56, %s2366_s10 }
0x1d7d   :  { %v2318_v19 = vpop.eup %2317 }
0x1d7e   :  { %v1210_v62 = vadd.f32 1.0, %v2318_v19 }
0x1d80   :  { %2319 = vrcp.f32 %v1210_v62 }
0x1d8a   :  { %v2320_v60 = vpop.eup %2319 }
0x1d8b   :  { %v1214_v59 = vmul.f32 %v2320_v60, %v1152_v40 }
0x1dee   :  { %v1217_v2 = vpop.permute.xlu1 %1216 }
0x1def   :  { %v1219_v3 = vmul.f32 %v2320_v60, %v1217_v2 }
0x1df1   :  { %1221 = vrot.lane.b32.xlu0 %v1219_v3, %s2367_s11 }
0x1e63   :  { %v1222_v18 = vpop.permute.xlu0 %1221 }
0x1e64   :  { %v1224_v42 = vadd.f32 %v1222_v18, %v1214_v59 }
0x1e66   :  { %2321 = vtanh.f32 %v1224_v42 }
0x1e70   :  { %v2322_v16 = vpop.eup %2321 }
0x1e71   :  { %1227 = vrot.lane.b32.xlu1 %v2322_v16, %s2366_s10 }
0x1ee3   :  { %v1228_v17 = vpop.permute.xlu1 %1227 }
0x1ee4   :  { %v2751_v15 = vmul.f32 %v2320_v60, %v1228_v17 }
0x1ee6   :  { %v1231_v23 = vpack.c.bf16 %v2751_v15, %v2751_v15 }
0x1ee8   :  { %1233 = vrot.lane.b32.xlu0 %v1231_v23, %s2367_s11 }
0x1f5a   :  { %v1234_v25 = vpop.permute.xlu0 %1233 }
0x1f5b   :  { %2157 = vmatmul.mubr.msk.bf16.vlgmr.msra.gmra.mrb[40].mxu1 %vm268_vm3, %v1234_v25 }
0x1f5c   :  { %2169 = vmatpush3.bf16.msra.mxu1 %v2614_v53  ;;  %2172 = vmatprep.mubr.msk.bf16.mxu1 %vm2365_vm2, %v2364_v20 }
0x1f5d   :  { %2170 = vmatprep.subr.bf16.mxu1 %v2364_v20 }
0x1f60   :  { %2171 = vmatpush3.bf16.msra.mxu1 %v2622_v55 }
0x1f61   :  { %2184 = vmatprep.subr.bf16.mxu1 %v2364_v20 }
0x202e   :  { %v1272_v26 = vpop.f32.mrb[40].mxu1 }
0x202f   :  { %v1278_v58 = vadd.f32 %v1272_v26, %v2705_v37  ;;  %v2158_v27 = vpop.f32.mrb[41].mxu1 }
0x2030   :  { %v1275_v28 = vpop.f32.mrb[42].mxu1 }
0x2031   :  { %2323 = vtanh.f32 %v1278_v58  ;;  %v2159_v0 = vpop.f32.mrb[43].mxu1  ;;  %v1968_v31 = vmul.f32 -1.442695, %v1278_v58 }
0x2033   :  { %2325 = vpow2.f32 %v1968_v31 }
0x203b   :  { %v2324_v30 = vpop.eup %2323 }
0x203c   :  { %1288 = vrot.lane.b32.xlu1 %v2324_v30, %s2366_s10 }
0x203d   :  { %v2326_v32 = vpop.eup %2325 }
0x203e   :  { %v1282_v33 = vadd.f32 1.0, %v2326_v32 }
0x2040   :  { %2327 = vrcp.f32 %v1282_v33 }
0x204a   :  { %v2328_v34 = vpop.eup %2327 }
0x204b   :  { %v1286_v38 = vmul.f32 %v2328_v34, %v1224_v42 }
0x20ae   :  { %v1289_v35 = vpop.permute.xlu1 %1288 }
0x20af   :  { %v1291_v36 = vmul.f32 %v2328_v34, %v1289_v35 }
0x20b1   :  { %1293 = vrot.lane.b32.xlu0 %v1291_v36, %s2367_s11 }
0x2123   :  { %v1294_v39 = vpop.permute.xlu0 %1293 }
0x2124   :  { %v1296_v37 = vadd.f32 %v1294_v39, %v1286_v38  ;;  %v2232_v38 = vld [vmem:[%s2946_s1 + $0x50] ss:$8 sps:$4 sm:$0xff]  }
0x2126   :  { %2329 = vtanh.f32 %v1296_v37 }
0x2130   :  { %v2330_v40 = vpop.eup %2329 }
0x2131   :  { %1299 = vrot.lane.b32.xlu1 %v2330_v40, %s2366_s10 }
0x21a3   :  { %v1300_v45 = vpop.permute.xlu1 %1299 }
0x21a4   :  { %v2767_v46 = vmul.f32 %v2328_v34, %v1300_v45  ;;  %v2233_v45 = vld [vmem:[%s2946_s1 + $0x60] ss:$8 sps:$4 sm:$0xff]  }
0x21a6   :  { %v1303_v5 = vpack.c.bf16 %v2767_v46, %v2767_v46 }
0x21a8   :  { %1305 = vrot.lane.b32.xlu0 %v1303_v5, %s2367_s11 }
0x221a   :  { %v1306_v47 = vpop.permute.xlu0 %1305 }
0x221b   :  { %2165 = vmatmul.mubr.msk.bf16.vlgmr.msra.gmra.mrb[44].mxu0 %vm268_vm3, %v1306_v47 }
0x221c   :  { %2177 = vmatpush3.bf16.msra.mxu0 %v2614_v53  ;;  %2180 = vmatprep.mubr.msk.bf16.mxu0 %vm2365_vm2, %v2364_v20 }
0x221d   :  { %2178 = vmatprep.subr.bf16.mxu0 %v2364_v20 }
0x2220   :  { %2179 = vmatpush3.bf16.msra.mxu0 %v2622_v55 }
0x2221   :  { %2192 = vmatprep.subr.bf16.mxu0 %v2232_v38 }
0x22ee   :  { %v1344_v50 = vpop.f32.mrb[44].mxu0 }
0x22ef   :  { %v1350_v24 = vadd.f32 %v1344_v50, %v2707_v41  ;;  %v2166_v44 = vpop.f32.mrb[45].mxu0 }
0x22f0   :  { %v1347_v29 = vpop.f32.mrb[46].mxu0 }
0x22f1   :  { %2331 = vtanh.f32 %v1350_v24  ;;  %v2167_v49 = vpop.f32.mrb[47].mxu0  ;;  %v1970_v61 = vmul.f32 -1.442695, %v1350_v24 }
0x22f3   :  { %2333 = vpow2.f32 %v1970_v61 }
0x22fb   :  { %v2332_v56 = vpop.eup %2331 }
0x22fc   :  { %1360 = vrot.lane.b32.xlu1 %v2332_v56, %s2366_s10 }
0x22fd   :  { %v2334_v19 = vpop.eup %2333 }
0x22fe   :  { %v1354_v62 = vadd.f32 1.0, %v2334_v19 }
0x2300   :  { %2335 = vrcp.f32 %v1354_v62 }
0x230a   :  { %v2336_v60 = vpop.eup %2335 }
0x230b   :  { %v1358_v59 = vmul.f32 %v2336_v60, %v1296_v37 }
0x236e   :  { %v1361_v2 = vpop.permute.xlu1 %1360 }
0x236f   :  { %v1363_v3 = vmul.f32 %v2336_v60, %v1361_v2 }
0x2371   :  { %1365 = vrot.lane.b32.xlu0 %v1363_v3, %s2367_s11 }
0x23e3   :  { %v1366_v18 = vpop.permute.xlu0 %1365 }
0x23e4   :  { %v1368_v41 = vadd.f32 %v1366_v18, %v1358_v59 }
0x23e6   :  { %2337 = vtanh.f32 %v1368_v41 }
0x23f0   :  { %v2338_v42 = vpop.eup %2337 }
0x23f1   :  { %1371 = vrot.lane.b32.xlu1 %v2338_v42, %s2366_s10 }
0x2463   :  { %v1372_v16 = vpop.permute.xlu1 %1371 }
0x2464   :  { %v2782_v17 = vmul.f32 %v2336_v60, %v1372_v16 }
0x2466   :  { %v1375_v23 = vpack.c.bf16 %v2782_v17, %v2782_v17 }
0x2468   :  { %1377 = vrot.lane.b32.xlu0 %v1375_v23, %s2367_s11 }
0x24da   :  { %v1378_v25 = vpop.permute.xlu0 %1377 }
0x24db   :  { %2173 = vmatmul.mubr.msk.bf16.vlgmr.msra.gmra.mrb[44].mxu1 %vm268_vm3, %v1378_v25 }
0x24dc   :  { %2185 = vmatpush3.bf16.msra.mxu1 %v2614_v53  ;;  %2188 = vmatprep.mubr.msk.bf16.mxu1 %vm2365_vm2, %v2364_v20 }
0x24dd   :  { %2186 = vmatprep.subr.bf16.mxu1 %v2364_v20 }
0x24e0   :  { %2187 = vmatpush3.bf16.msra.mxu1 %v2622_v55 }
0x25ae   :  { %v1416_v26 = vpop.f32.mrb[44].mxu1 }
0x25af   :  { %v1422_v58 = vadd.f32 %v1416_v26, %v2711_v43  ;;  %v2174_v27 = vpop.f32.mrb[45].mxu1 }
0x25b0   :  { %v1419_v28 = vpop.f32.mrb[46].mxu1 }
0x25b1   :  { %2339 = vtanh.f32 %v1422_v58  ;;  %v2175_v0 = vpop.f32.mrb[47].mxu1  ;;  %v1972_v31 = vmul.f32 -1.442695, %v1422_v58 }
0x25b3   :  { %2341 = vpow2.f32 %v1972_v31 }
0x25bb   :  { %v2340_v30 = vpop.eup %2339 }
0x25bc   :  { %1432 = vrot.lane.b32.xlu1 %v2340_v30, %s2366_s10 }
0x25bd   :  { %v2342_v53 = vpop.eup %2341 }
0x25be   :  { %v1426_v32 = vadd.f32 1.0, %v2342_v53 }
0x25c0   :  { %2343 = vrcp.f32 %v1426_v32 }
0x25ca   :  { %v2344_v33 = vpop.eup %2343 }
0x25cb   :  { %v1430_v55 = vmul.f32 %v2344_v33, %v1368_v41 }
0x262e   :  { %v1433_v34 = vpop.permute.xlu1 %1432 }
0x262f   :  { %v1435_v20 = vmul.f32 %v2344_v33, %v1433_v34 }
0x2631   :  { %1437 = vrot.lane.b32.xlu0 %v1435_v20, %s2367_s11 }
0x26a3   :  { %v1438_v35 = vpop.permute.xlu0 %1437 }
0x26a4   :  { %v2796_v43 = vadd.f32 %v1438_v35, %v1430_v55 }
0x26a6   :  { %2345 = vtanh.f32 %v2796_v43 }
0x26b0   :  { %v2346_v36 = vpop.eup %2345 }
0x26b1   :  { %1443 = vrot.lane.b32.xlu1 %v2346_v36, %s2366_s10 }
0x2723   :  { %v1444_v39 = vpop.permute.xlu1 %1443 }
0x2724   :  { %v2803_v37 = vmul.f32 %v2344_v33, %v1444_v39 }
0x2726   :  { %v1447_v40 = vpack.c.bf16 %v2803_v37, %v2803_v37 }
0x2728   :  { %1449 = vrot.lane.b32.xlu0 %v1447_v40, %s2367_s11 }
0x279a   :  { %v1450_v5 = vpop.permute.xlu0 %1449 }
0x279b   :  { %2181 = vmatmul.mubr.msk.bf16.vlgmr.msra.gmra.mrb[48].mxu0 %vm268_vm3, %v1450_v5 }
0x279c   :  { %2193 = vmatpush3.bf16.msra.mxu0 %v2232_v38  ;;  %2196 = vmatprep.mubr.msk.bf16.mxu0 %vm268_vm3, %v2647_v21  ;;  %v1977_v21 = vld [vmem:[%s2948_s2 + $0x2] ss:$0 sm:$0xff] }
0x279d   :  { %2194 = vmatprep.subr.bf16.mxu0 %v2233_v45 }
0x27a0   :  { %2195 = vmatpush3.bf16.msra.mxu0 %v2233_v45 }
0x27a3   :  { %2197 = vmatmul.mubr.msk.bf16.vlgmr.msra.gmra.mrb[52].mxu0 %vm268_vm3, %v2665_v8 }
0x27a4   :  { %2200 = vmatprep.mubr.msk.bf16.mxu0 %vm268_vm3, %v2681_v11 }
0x27ab   :  { %2201 = vmatmul.mubr.msk.bf16.gmra.mrb[56].mxu0 %vm268_vm3, %v2696_v14 }
0x286e   :  { %v1488_v47 = vpop.f32.mrb[48].mxu0 }
0x286f   :  { %v1494_v50 = vadd.f32 %v1488_v47, %v2713_v4  ;;  %v2182_v24 = vpop.f32.mrb[49].mxu0  ;;  %v2234_v47 = vld [vmem:[%s2946_s1 + $0x70] ss:$8 sps:$4 sm:$0xff]  }
0x2870   :  { %v1491_v44 = vpop.f32.mrb[50].mxu0  ;;  %2204 = vmatprep.subr.bf16.mxu1 %v2234_v47 }
0x2871   :  { %2347 = vtanh.f32 %v1494_v50  ;;  %v2183_v29 = vpop.f32.mrb[51].mxu0  ;;  %v1974_v34 = vmul.f32 -1.442695, %v1494_v50 }
0x2873   :  { %2349 = vpow2.f32 %v1974_v34  ;;  %v1984_v34 = vld [vmem:[%s2948_s2 + $0x3] ss:$0 sm:$0xff] }
0x2876   :  { %v2198_v49 = vpop.f32.mrb[52].mxu0 }
0x2877   :  { %v1690_v56 = vadd.f32 %v2198_v49, %v1977_v21  ;;  %v1681_v8 = vpop.f32.mrb[53].mxu0 }
0x2878   :  { %v1682_v61 = vadd.f32 %v1977_v21, %v1681_v8  ;;  %v2199_v19 = vpop.f32.mrb[54].mxu0 }
0x2879   :  { %v1693_v11 = vadd.f32 %v2199_v19, %v1977_v21  ;;  %v1684_v62 = vpop.f32.mrb[55].mxu0  ;;  %v1714_v2 = vmax.f32 %v1690_v56, 0.0 }
0x287a   :  { %v1685_v60 = vadd.f32 %v1977_v21, %v1684_v62  ;;  %v1712_v4 = vmax.f32 %v1682_v61, 0.0 }
0x287b   :  { %v2348_v14 = vpop.eup %2347  ;;  %v1715_v3 = vmax.f32 %v1693_v11, 0.0 }
0x287c   :  { %v1713_v59 = vmax.f32 %v1685_v60, 0.0  ;;  %1504 = vrot.lane.b32.xlu1 %v2348_v14, %s2366_s10 }
0x287d   :  { %v1721_v18 = vpack.c.bf16 %v1715_v3, %v1714_v2  ;;  %v2350_v20 = vpop.eup %2349 }
0x287e   :  { %v1720_v41 = vpack.c.bf16 %v1713_v59, %v1712_v4  ;;  %v2202_v42 = vpop.f32.mrb[56].mxu0  ;;  %v1498_v55 = vadd.f32 1.0, %v2350_v20 }
0x287f   :  { %v1706_v16 = vadd.f32 %v2202_v42, %v1977_v21  ;;  %v1697_v23 = vpop.f32.mrb[57].mxu0 }
0x2880   :  { %v1698_v25 = vadd.f32 %v1977_v21, %v1697_v23  ;;  %v2203_v26 = vpop.f32.mrb[58].mxu0  ;;  %2351 = vrcp.f32 %v1498_v55 }
0x2881   :  { %v1709_v58 = vadd.f32 %v2203_v26, %v1977_v21  ;;  %v1700_v27 = vpop.f32.mrb[59].mxu0  ;;  %v1718_v0 = vmax.f32 %v1706_v16, 0.0 }
0x2882   :  { %v1701_v28 = vadd.f32 %v1977_v21, %v1700_v27  ;;  %v1716_v31 = vmax.f32 %v1698_v25, 0.0 }
0x2883   :  { %v1719_v30 = vmax.f32 %v1709_v58, 0.0 }
0x2884   :  { %v1717_v53 = vmax.f32 %v1701_v28, 0.0 }
0x2885   :  { %v1723_v32 = vpack.c.bf16 %v1719_v30, %v1718_v0 }
0x2886   :  { %v1722_v33 = vpack.c.bf16 %v1717_v53, %v1716_v31 }
0x288a   :  { %v2352_v35 = vpop.eup %2351 }
0x288b   :  { %v1502_v39 = vmul.f32 %v2352_v35, %v2796_v43 }
0x28ee   :  { %v1505_v36 = vpop.permute.xlu1 %1504 }
0x28ef   :  { %v1507_v38 = vmul.f32 %v2352_v35, %v1505_v36 }
0x28f1   :  { %1509 = vrot.lane.b32.xlu0 %v1507_v38, %s2367_s11 }
0x2963   :  { %v1510_v40 = vpop.permute.xlu0 %1509 }
0x2964   :  { %v1512_v45 = vadd.f32 %v1510_v40, %v1502_v39 }
0x2966   :  { %2353 = vtanh.f32 %v1512_v45 }
0x2970   :  { %v2354_v5 = vpop.eup %2353 }
0x2971   :  { %1515 = vrot.lane.b32.xlu1 %v2354_v5, %s2366_s10 }
0x29e3   :  { %v1516_v50 = vpop.permute.xlu1 %1515 }
0x29e4   :  { %v1518_v24 = vmul.f32 %v2352_v35, %v1516_v50 }
0x29e6   :  { %v1519_v44 = vpack.c.bf16 %v1518_v24, %v1518_v24 }
0x29e8   :  { %1521 = vrot.lane.b32.xlu0 %v1519_v44, %s2367_s11 }
0x2a5a   :  { %v1522_v29 = vpop.permute.xlu0 %1521 }
0x2a5b   :  { %2189 = vmatmul.mubr.msk.bf16.vlgmr.msra.gmra.mrb[48].mxu1 %vm268_vm3, %v1522_v29 }
0x2a5c   :  { %2206 = vmatprep.mubr.msk.bf16.mxu1 %vm1734_vm5, %v1720_v41  ;;  %2205 = vmatpush3.bf16.msra.mxu1 %v2234_v47 }
0x2a63   :  { %2207 = vmatmul.mubr.msk.bf16.vlgmr.msra.gmra.mrb[52].mxu1 %vm1734_vm5, %v1721_v18 }
0x2a64   :  { %2210 = vmatprep.mubr.msk.bf16.mxu1 %vm1734_vm5, %v1722_v33 }
0x2a6b   :  { %2211 = vmatmul.mubr.msk.bf16.gmra.mrb[56].mxu1 %vm1734_vm5, %v1723_v32 }
0x2b2e   :  { %v1560_v43 = vpop.f32.mrb[48].mxu1 }
0x2b2f   :  { %v1566_v21 = vadd.f32 %v1560_v43, %v2715_v51  ;;  %v2190_v49 = vpop.f32.mrb[49].mxu1 }
0x2b30   :  { %v1563_v56 = vpop.f32.mrb[50].mxu1 }
0x2b31   :  { %2355 = vtanh.f32 %v1566_v21  ;;  %v2191_v8 = vpop.f32.mrb[51].mxu1  ;;  %v1976_v59 = vmul.f32 -1.442695, %v1566_v21 }
0x2b33   :  { %2357 = vpow2.f32 %v1976_v59 }
0x2b36   :  { %v2208_v61 = vpop.f32.mrb[52].mxu1 }
0x2b37   :  { %v1781_v19 = vpop.f32.mrb[53].mxu1  ;;  %v1790_v38 = vadd.f32 %v2208_v61, %v1984_v34 }
0x2b38   :  { %v2209_v11 = vpop.f32.mrb[54].mxu1  ;;  %v1782_v35 = vadd.f32 %v1984_v34, %v1781_v19 }
0x2b39   :  { %v1784_v62 = vpop.f32.mrb[55].mxu1  ;;  %v1793_v39 = vadd.f32 %v2209_v11, %v1984_v34 }
0x2b3a   :  { %v1785_v36 = vadd.f32 %v1984_v34, %v1784_v62 }
0x2b3b   :  { %v2356_v60 = vpop.eup %2355 }
0x2b3c   :  { %1576 = vrot.lane.b32.xlu1 %v2356_v60, %s2366_s10 }
0x2b3d   :  { %v2358_v18 = vpop.eup %2357 }
0x2b3e   :  { %v2212_v14 = vpop.f32.mrb[56].mxu1  ;;  %v1570_v41 = vadd.f32 1.0, %v2358_v18 }
0x2b3f   :  { %v1797_v2 = vpop.f32.mrb[57].mxu1  ;;  %v1806_v5 = vadd.f32 %v2212_v14, %v1984_v34 }
0x2b40   :  { %v2213_v3 = vpop.f32.mrb[58].mxu1  ;;  %2359 = vrcp.f32 %v1570_v41  ;;  %v1798_v40 = vadd.f32 %v1984_v34, %v1797_v2 }
0x2b41   :  { %v1800_v4 = vpop.f32.mrb[59].mxu1  ;;  %v1809_v47 = vadd.f32 %v2213_v3, %v1984_v34 }
0x2b4a   :  { %v2360_v51 = vpop.eup %2359 }
0x2b4b   :  { %v1574_v23 = vmul.f32 %v2360_v51, %v1512_v45  ;;  %v1801_v45 = vadd.f32 %v1984_v34, %v1800_v4 }
0x2bae   :  { %v1577_v42 = vpop.permute.xlu1 %1576 }
0x2baf   :  { %v1579_v16 = vmul.f32 %v2360_v51, %v1577_v42 }
0x2bb1   :  { %1581 = vrot.lane.b32.xlu0 %v1579_v16, %s2367_s11 }
0x2bb5   :  { %1592 = vrot.lane.b32.xlu0 %v2720_v22, %s2367_s11 }
0x2bb9   :  { %1601 = vrot.lane.b32.xlu0 %v2735_v54, %s2367_s11 }
0x2bbd   :  { %1610 = vrot.lane.b32.xlu0 %v2751_v15, %s2367_s11 }
0x2bc1   :  { %1619 = vrot.lane.b32.xlu0 %v2767_v46, %s2367_s11 }
0x2c23   :  { %v1582_v25 = vpop.permute.xlu0 %1581 }
0x2c24   :  { %v1584_v26 = vadd.f32 %v1582_v25, %v1574_v23 }
0x2c26   :  { %2361 = vtanh.f32 %v1584_v26 }
0x2c27   :  { %v1593_v22 = vpop.permute.xlu0 %1592 }
0x2c2b   :  { %v1602_v28 = vpop.permute.xlu0 %1601 }
0x2c2f   :  { %v1611_v46 = vpop.permute.xlu0 %1610 }
0x2c30   :  { %v2362_v58 = vpop.eup %2361 }
0x2c31   :  { %1587 = vrot.lane.b32.xlu1 %v2362_v58, %s2366_s10 }
0x2c33   :  { %v1620_v53 = vpop.permute.xlu0 %1619 }
0x2c35   :  { %1605 = vrot.lane.b32.xlu1 %v1518_v24, %s2367_s11 }
0x2c39   :  { %1614 = vrot.lane.b32.xlu1 %v2803_v37, %s2367_s11 }
0x2ca3   :  { %v1588_v54 = vpop.permute.xlu1 %1587 }
0x2ca4   :  { %v1590_v27 = vmul.f32 %v2360_v51, %v1588_v54 }
0x2ca6   :  { %1596 = vrot.lane.b32.xlu1 %v1590_v27, %s2367_s11 }
0x2ca7   :  { %v1606_v15 = vpop.permute.xlu1 %1605 }
0x2ca8   :  { %v1608_v37 = vsel %vm41_vm4, %v1602_v28, %v1606_v15  ;;  %v1629_v20 = vsel %vm41_vm4, %v1606_v15, %v1602_v28 }
0x2caa   :  { %1623 = vrot.lane.b32.xlu1 %v2782_v17, %s2367_s11 }
0x2cab   :  { %v1615_v0 = vpop.permute.xlu1 %1614 }
0x2cac   :  { %v1617_v30 = vsel %vm41_vm4, %v1611_v46, %v1615_v0  ;;  %v1628_v55 = vsel %vm41_vm4, %v1615_v0, %v1611_v46 }
0x2cad   :  { %1832 = vrot.lane.b32.xlu0 %v1617_v30, %s2367_s11 }
0x2cae   :  { %1830 = vrot.lane.b32.xlu1 %v1608_v37, %s2367_s11 }
0x2d18   :  { %v1597_v31 = vpop.permute.xlu1 %1596 }
0x2d19   :  { %v1630_v50 = vsel %vm41_vm4, %v1597_v31, %v1593_v22  ;;  %v1599_v24 = vsel %vm41_vm4, %v1593_v22, %v1597_v31 }
0x2d1c   :  { %v1624_v32 = vpop.permute.xlu1 %1623 }
0x2d1d   :  { %v1627_v33 = vsel %vm41_vm4, %v1624_v32, %v1620_v53  ;;  %v1626_v17 = vsel %vm41_vm4, %v1620_v53, %v1624_v32 }
0x2d1e   :  { %1836 = vrot.lane.b32.xlu0 %v1627_v33, %s2367_s11  ;;  %1834 = vrot.lane.b32.xlu1 %v1626_v17, %s2367_s11 }
0x2d1f   :  { %v1833_v44 = vpop.permute.xlu0 %1832 }
0x2d20   :  { %v1831_v29 = vpop.permute.xlu1 %1830  ;;  %v1886_v57 = vsel %vm268_vm3, %v2656_v6, %v1833_v44 }
0x2d21   :  { %v1885_v22 = vsel %vm268_vm3, %v2639_v63, %v1831_v29 }
0x2d22   :  { %1840 = vrot.lane.b32.xlu0 %v1629_v20, %s2367_s11  ;;  %1838 = vrot.lane.b32.xlu1 %v1628_v55, %s2367_s11 }
0x2d26   :  { %1862 = vrot.lane.b32.xlu1 %v1785_v36, %s2366_s10  ;;  %1860 = vrot.lane.b32.xlu0 %v1782_v35, %s2366_s10 }
0x2d2a   :  { %1866 = vrot.lane.b32.xlu1 %v1793_v39, %s2366_s10  ;;  %1864 = vrot.lane.b32.xlu0 %v1790_v38, %s2366_s10 }
0x2d2e   :  { %1870 = vrot.lane.b32.xlu1 %v1801_v45, %s2366_s10  ;;  %1868 = vrot.lane.b32.xlu0 %v1798_v40, %s2366_s10 }
0x2d32   :  { %1874 = vrot.lane.b32.xlu1 %v1809_v47, %s2366_s10  ;;  %1872 = vrot.lane.b32.xlu0 %v1806_v5, %s2366_s10 }
0x2d36   :  { %1842 = vrot.lane.b32.xlu1 %v1630_v50, %s2367_s11  ;;  %1828 = vrot.lane.b32.xlu0 %v1599_v24, %s2367_s11 }
0x2d3a   :  { %1817 = vrot.lane.b32.xlu1 %v1584_v26, %s2366_s10  ;;  %1813 = vrot.lane.b32.xlu0 %v2587_v48, %s2366_s10 }
0x2d90   :  { %v1837_v43 = vpop.permute.xlu0 %1836  ;;  %v1835_v21 = vpop.permute.xlu1 %1834 }
0x2d91   :  { %v1888_v48 = vsel %vm268_vm3, %v2673_v9, %v1837_v43  ;;  %v1887_v54 = vsel %vm268_vm3, %v2660_v7, %v1835_v21 }
0x2d94   :  { %v1841_v49 = vpop.permute.xlu0 %1840  ;;  %v1839_v56 = vpop.permute.xlu1 %1838 }
0x2d95   :  { %v1889_v14 = vsel %vm268_vm3, %v2677_v10, %v1839_v56  ;;  %v1890_v9 = vsel %vm268_vm3, %v2692_v13, %v1841_v49 }
0x2d98   :  { %v1863_v8 = vpop.permute.xlu1 %1862  ;;  %v1861_v61 = vpop.permute.xlu0 %1860 }
0x2d9c   :  { %v1867_v19 = vpop.permute.xlu1 %1866  ;;  %v1865_v11 = vpop.permute.xlu0 %1864 }
0x2d9d   :  { %v1895_v62 = vsel %vm1892_vm7, %v1886_v57, %v1865_v11  ;;  %v1896_v15 = vsel %vm1892_vm7, %v1887_v54, %v1867_v19 }
0x2d9e   :  { %v1904_v60 = vsel %vm1901_vm6, %v1895_v62, %v1590_v27 }
0x2d9f   :  { %1912 = vst [vmem:[%s2949_s3 + $0x10] sm:$0xff] %v1904_v60 }
0x2da0   :  { %v1871_v2 = vpop.permute.xlu1 %1870  ;;  %v1869_v3 = vpop.permute.xlu0 %1868 }
0x2da1   :  { %v1898_v6 = vsel %vm1892_vm7, %v1889_v14, %v1871_v2  ;;  %v1897_v4 = vsel %vm1892_vm7, %v1888_v48, %v1869_v3 }
0x2da2   :  { %v1907_v59 = vsel %vm1901_vm6, %v1898_v6, 0.0  ;;  %v1906_v18 = vsel %vm1901_vm6, %v1897_v4, 0.0 }
0x2da3   :  { %1915 = vst [vmem:[%s2949_s3 + $0x28] sm:$0xff] %v1907_v59  ;;  %1914 = vst [vmem:[%s2949_s3 + $0x20] sm:$0xff] %v1906_v18 }
0x2da4   :  { %v1875_v10 = vpop.permute.xlu1 %1874  ;;  %v1873_v41 = vpop.permute.xlu0 %1872 }
0x2da5   :  { %v1899_v51 = vsel %vm1892_vm7, %v1890_v9, %v1873_v41 }
0x2da6   :  { %v1908_v42 = vsel %vm1901_vm6, %v1899_v51, 0.0 }
0x2da7   :  { %1916 = vst [vmem:[%s2949_s3 + $0x30] sm:$0xff] %v1908_v42 }
0x2da8   :  { %v1843_v16 = vpop.permute.xlu1 %1842  ;;  %v1829_v23 = vpop.permute.xlu0 %1828 }
0x2da9   :  { %v1891_v25 = vsel %vm268_vm3, %v2688_v12, %v1843_v16  ;;  %v1884_v26 = vsel %vm268_vm3, %v2643_v1, %v1829_v23  ;;  %v1894_v12 = vsel %vm1892_vm7, %v1885_v22, %v1863_v8 }
0x2daa   :  { %v1900_v13 = vsel %vm1892_vm7, %v1891_v25, %v1875_v10  ;;  %v1893_v58 = vsel %vm1892_vm7, %v1884_v26, %v1861_v61 }
0x2dab   :  { %v1909_v27 = vsel %vm1901_vm6, %v1900_v13, 0.0  ;;  %v1902_v28 = vsel %vm1901_vm6, %v1893_v58, %v2605_v52 }
0x2dac   :  { %1917 = vst [vmem:[%s2949_s3 + $0x38] sm:$0xff] %v1909_v27  ;;  %1910 = vst [vmem:[%s2949_s3] sm:$0xff] %v1902_v28  ;;  %v1818_v63 = vpop.permute.xlu1 %1817  ;;  %v1814_v1 = vpop.permute.xlu0 %1813 }
0x2dad   :  { %v1905_v7 = vsel %vm1901_vm6, %v1896_v15, %v1818_v63  ;;  %v1903_v46 = vsel %vm1901_vm6, %v1894_v12, %v1814_v1 }
0x2dae   :  { %1913 = vst [vmem:[%s2949_s3 + $0x18] sm:$0xff] %v1905_v7  ;;  %1911 = vst [vmem:[%s2949_s3 + $0x8] sm:$0xff] %v1903_v46 }

</bundles_post_ra>
